<compile_context>
chip_gen: v5e
topology: v5e:2x2
jax: 0.10.0
libtpu: 0.0.40
codegen_flags: <defaults>
</compile_context>

<pallas_src>
import math
import functools

import jax
import jax.numpy as jnp
from jax import lax
from jax.experimental import pallas as pl
from jax.experimental.pallas import tpu as pltpu

_INV_SQRT2 = 0.7071067811865476


def _gelu_exact(x):
    # Exact erf-GELU (matches nn.GELU() default); multiply, never divide.
    return 0.5 * x * (1.0 + lax.erf(x * _INV_SQRT2))


def _resblock_kernel(x_ref, w1_ref, b1_ref, w2_ref, b2_ref, o_ref, *,
                     width, matmul_dtype):
    """One grid step processes a flat (TILE_M, C) slab, TILE_M = row_tile * W.

    x_ref : (TILE_M, C)  channels-last rows, flat index m = r*W + w
    w*_ref: (3, C, C)    conv taps [k=-1, k=0, k=+1]; BN scale folded in; matmul dtype
    b*_ref: (1, C)       folded conv-bias + BN shift (f32)
    """
    x = x_ref[...]                       # (M, C) f32
    m, _ = x.shape

    # Boundary masks at shape (M, 1), built once and reused by both conv layers.
    # Roll wrap-around rows coincide exactly with these padded positions, so the
    # same masks make the circular rolls behave like zero-padding.
    wpos = lax.broadcasted_iota(jnp.int32, (m, 1), 0) % width
    not_first = (wpos != 0).astype(x.dtype)           # w == 0   has no left neighbor
    not_last = (wpos != width - 1).astype(x.dtype)    # w == W-1 has no right neighbor

    def conv_bn_gelu(h, w_ref, b_ref):
        # Shifted copies via XLU sublane rolls; shifts must be non-negative, so the
        # "+1" (right-neighbor) shift is the equivalent positive rotation M-1.
        left = pltpu.roll(h, 1, axis=0) * not_first        # h[m-1]
        right = pltpu.roll(h, m - 1, axis=0) * not_last    # h[m+1]
        # Three accumulated MXU dots — no (M, 3C) im2col concatenate copy.
        y = jnp.dot(h.astype(matmul_dtype), w_ref[1],
                    preferred_element_type=jnp.float32)
        y = y + jnp.dot(left.astype(matmul_dtype), w_ref[0],
                        preferred_element_type=jnp.float32)
        y = y + jnp.dot(right.astype(matmul_dtype), w_ref[2],
                        preferred_element_type=jnp.float32)
        y = y + b_ref[...]               # folded BN/bias shift (scale already in w)
        return _gelu_exact(y)

    h1 = conv_bn_gelu(x, w1_ref, b1_ref)
    h2 = conv_bn_gelu(h1, w2_ref, b2_ref)
    o_ref[...] = (h2 + x).astype(o_ref.dtype)


def _choose_row_tile(R, W, C, itemsize=4, *, vmem_budget=16 << 20, max_m=8192,
                     min_grid_steps=8):
    """Largest row tile (in N*H rows) such that:
       - it divides R,
       - the live f32 working set (double-buffered I/O + in-kernel temps, ~9x the
         input tile now that there is no 3C slab) stays under the VMEM budget,
       - the flat sublane count (row_tile*W) is a multiple of 8 (or the block is full),
       - at least `min_grid_steps` grid steps remain (pipelining on 1-TC parts,
         >= min_grid_steps/2 tiles per TensorCore on v7x)."""
    live_factor = 9
    cap = max(1, vmem_budget // (live_factor * W * C * itemsize))
    cap = min(cap, max(1, max_m // W))
    divs = [t for t in range(1, R + 1)
            if R % t == 0 and t <= cap and ((t * W) % 8 == 0 or t == R)]
    if not divs:
        return R
    multi = [t for t in divs if R // t >= min_grid_steps]
    return max(multi) if multi else max(divs)


def resblock_pallas(x_nchw, params, *, row_tile=None, matmul_dtype=jnp.float32,
                    vmem_budget=16 << 20, min_grid_steps=8,
                    vmem_limit_bytes=64 << 20):
    """x_nchw: (N, C, H, W) float32. Returns (N, C, H, W).

    Tuning knobs (per review): v5e/v6e -> vmem_budget~48-64 MiB, vmem_limit~96 MiB;
    v7x -> keep defaults (64 MiB/TC). matmul_dtype=jnp.bfloat16 is the production
    setting (f32 MXU input costs 3-4x the passes)."""
    N, C, H, W = x_nchw.shape
    R = N * H
    w1, b1, w2, b2 = params                 # w: (3, C, C) scale-folded; b: (1, C)
    w1 = w1.astype(matmul_dtype)
    w2 = w2.astype(matmul_dtype)

    # NCHW -> channels-last, flattened to (R*W, C).
    # TODO(synk): keep the surrounding model channels-last to drop these transposes.
    x_flat = jnp.transpose(x_nchw, (0, 2, 3, 1)).reshape(R * W, C)

    if row_tile is None:
        row_tile = _choose_row_tile(R, W, C, x_flat.dtype.itemsize,
                                    vmem_budget=vmem_budget,
                                    min_grid_steps=min_grid_steps)
    assert R % row_tile == 0, "row count must be divisible by row_tile"
    tile_m = row_tile * W
    grid = (R // row_tile,)

    kernel = functools.partial(_resblock_kernel, width=W, matmul_dtype=matmul_dtype)

    out = pl.pallas_call(
        kernel,
        out_shape=jax.ShapeDtypeStruct((R * W, C), x_flat.dtype),
        grid_spec=pltpu.PrefetchScalarGridSpec(
            num_scalar_prefetch=0,
            grid=grid,
            in_specs=[
                pl.BlockSpec((tile_m, C), lambda i: (i, 0)),     # x slab
                pl.BlockSpec((3, C, C), lambda i: (0, 0, 0)),    # layer-1 taps
                pl.BlockSpec((1, C), lambda i: (0, 0)),          # layer-1 shift
                pl.BlockSpec((3, C, C), lambda i: (0, 0, 0)),    # layer-2 taps
                pl.BlockSpec((1, C), lambda i: (0, 0)),          # layer-2 shift
            ],
            out_specs=pl.BlockSpec((tile_m, C), lambda i: (i, 0)),
        ),
        compiler_params=pltpu.CompilerParams(
            dimension_semantics=("parallel",),   # shard row tiles across v7x TCs
            vmem_limit_bytes=vmem_limit_bytes,
        ),
    )(x_flat, w1, b1, w2, b2)

    # (R*W, C) -> NCHW
    return jnp.transpose(out.reshape(N, H, W, C), (0, 3, 1, 2))


def make_params(key, C):
    """Deterministic synthetic weights matching the PyTorch module's shapes,
    pre-folded for the kernel (BN scale into conv weights, shift kept additive)."""
    ks = jax.random.split(key, 12)
    eps = 1e-5

    def conv_w(k):
        fan_in = C * 1 * 3
        bound = 1.0 / math.sqrt(fan_in)
        return jax.random.uniform(k, (C, C, 1, 3), jnp.float32, -bound, bound)

    def conv_b(k):
        bound = 1.0 / math.sqrt(C * 3)
        return jax.random.uniform(k, (C,), jnp.float32, -bound, bound)

    def bn(kg, kb, km, kv):
        gamma = 1.0 + 0.1 * jax.random.normal(kg, (C,), jnp.float32)
        beta = 0.1 * jax.random.normal(kb, (C,), jnp.float32)
        mean = 0.1 * jax.random.normal(km, (C,), jnp.float32)
        var = jax.nn.softplus(jax.random.normal(kv, (C,), jnp.float32)) + 0.5
        return gamma, beta, mean, var

    cw1, cb1 = conv_w(ks[0]), conv_b(ks[1])
    cw2, cb2 = conv_w(ks[2]), conv_b(ks[3])
    g1, be1, m1, v1 = bn(ks[4], ks[5], ks[6], ks[7])
    g2, be2, m2, v2 = bn(ks[8], ks[9], ks[10], ks[11])

    def fold(cw, cb, g, be, m, v):
        # PyTorch weight (cout, cin, 1, kw) -> taps (kw, cin, cout)
        wk = jnp.transpose(cw[:, :, 0, :], (2, 1, 0))            # (3, cin, cout)
        scale = g / jnp.sqrt(v + eps)                            # (cout,)
        w = wk * scale[None, None, :]                            # BN scale folded in
        shift = be + (cb - m) * scale                            # conv bias folded in
        return w, shift.reshape(1, C)

    w1, b1 = fold(cw1, cb1, g1, be1, m1, v1)
    w2, b2 = fold(cw2, cb2, g2, be2, m2, v2)
    raw = (cw1, cb1, g1, be1, m1, v1, cw2, cb2, g2, be2, m2, v2)
    return (w1, b1, w2, b2), raw


def resblock_reference(x, raw):
    """Plain-JAX reference (NCHW) mirroring the PyTorch module in eval mode."""
    cw1, cb1, g1, be1, m1, v1, cw2, cb2, g2, be2, m2, v2 = raw
    eps = 1e-5

    def conv(h, w, b):
        y = lax.conv_general_dilated(
            h, w, window_strides=(1, 1), padding=((0, 0), (1, 1)),
            dimension_numbers=("NCHW", "OIHW", "NCHW"))
        return y + b[None, :, None, None]

    def bn(h, g, be, m, v):
        return (h - m[None, :, None, None]) / jnp.sqrt(v[None, :, None, None] + eps) \
            * g[None, :, None, None] + be[None, :, None, None]

    h = conv(x, cw1, cb1)
    h = _gelu_exact(bn(h, g1, be1, m1, v1))
    h = conv(h, cw2, cb2)
    h = _gelu_exact(bn(h, g2, be2, m2, v2))
    return h + x


if __name__ == "__main__":
    key = jax.random.PRNGKey(0)
    k_x, k_p = jax.random.split(key)

    N, C, H, W = 2, 4, 16, 16
    x = jax.random.normal(k_x, (N, C, H, W), jnp.float32)

    params, raw = make_params(k_p, C)

    ref = jax.block_until_ready(resblock_reference(x, raw))

    # Strict parity: f32 MXU path must match the module to 1e-4.
    out = jax.block_until_ready(resblock_pallas(x, params))
    assert jnp.allclose(out, ref, rtol=1e-4, atol=1e-4), (
        float(jnp.max(jnp.abs(out - ref)))
    )

    # Production bf16 MXU path is numerics-changing; exercise it with a loose check.
    out_bf16 = jax.block_until_ready(
        resblock_pallas(x, params, matmul_dtype=jnp.bfloat16))
    assert float(jnp.max(jnp.abs(out_bf16 - ref))) < 0.1

    print("KERNEL_OK")
</pallas_src>

<mosaic_0001>
module attributes {stable_mosaic.version = 11 : i64} {
  func.func @_resblock_kernel(%arg0: i32, %arg1: memref<64x4xf32, #tpu.memory_space<vmem>>, %arg2: memref<3x4x4xf32, #tpu.memory_space<vmem>>, %arg3: memref<1x4xf32, #tpu.memory_space<vmem>>, %arg4: memref<3x4x4xf32, #tpu.memory_space<vmem>>, %arg5: memref<1x4xf32, #tpu.memory_space<vmem>>, %arg6: memref<64x4xf32, #tpu.memory_space<vmem>>) attributes {dimension_semantics = [#tpu.dimension_semantics<parallel>], iteration_bounds = array<i64: 8>, scalar_prefetch = 0 : i64, scratch_operands = 0 : i64, tpu.core_type = #tpu.core_type<tc>, window_params = [{transform_indices = @transform_0, window_bounds = array<i64: 64, 4>}, {pipeline_mode = #tpu.pipeline_mode<synchronous>, transform_indices = @transform_1, window_bounds = array<i64: 3, 4, 4>}, {pipeline_mode = #tpu.pipeline_mode<synchronous>, transform_indices = @transform_2, window_bounds = array<i64: 1, 4>}, {pipeline_mode = #tpu.pipeline_mode<synchronous>, transform_indices = @transform_3, window_bounds = array<i64: 3, 4, 4>}, {pipeline_mode = #tpu.pipeline_mode<synchronous>, transform_indices = @transform_4, window_bounds = array<i64: 1, 4>}, {transform_indices = @transform_5, window_bounds = array<i64: 64, 4>}]} {
    %c0 = arith.constant 0 : index
    %c0_0 = arith.constant 0 : index
    %0 = vector.load %arg1[%c0, %c0_0] : memref<64x4xf32, #tpu.memory_space<vmem>>, vector<64x4xf32>
    %1 = tpu.iota {dimensions = array<i32: 0>} : vector<64x1xi32>
    %c16_i32 = arith.constant 16 : i32
    %c0_i32 = arith.constant 0 : i32
    %2 = arith.cmpi eq, %c16_i32, %c0_i32 : i32
    %c1_i32 = arith.constant 1 : i32
    %3 = arith.select %2, %c1_i32, %c16_i32 : i32
    %4 = vector.broadcast %3 : i32 to vector<64x1xi32>
    %5 = arith.remsi %1, %4 : vector<64x1xi32>
    %c0_i32_1 = arith.constant 0 : i32
    %6 = vector.broadcast %c0_i32_1 : i32 to vector<64x1xi32>
    %7 = arith.cmpi ne, %5, %6 : vector<64x1xi32>
    %c0_i32_2 = arith.constant 0 : i32
    %8 = vector.broadcast %c0_i32_2 : i32 to vector<64x1xi32>
    %9 = arith.cmpi slt, %5, %8 : vector<64x1xi32>
    %c0_i32_3 = arith.constant 0 : i32
    %10 = arith.cmpi slt, %3, %c0_i32_3 : i32
    %11 = vector.broadcast %10 : i1 to vector<64x1xi1>
    %12 = vector.broadcast %11 : vector<64x1xi1> to vector<64x1xi1>
    %13 = arith.xori %9, %12 : vector<64x1xi1>
    %14 = arith.andi %13, %7 : vector<64x1xi1>
    %15 = vector.broadcast %3 : i32 to vector<64x1xi32>
    %16 = arith.addi %5, %15 : vector<64x1xi32>
    %17 = arith.select %14, %16, %5 : vector<64x1xi1>, vector<64x1xi32>
    %c0_i32_4 = arith.constant 0 : i32
    %18 = vector.broadcast %c0_i32_4 : i32 to vector<64x1xi32>
    %19 = arith.cmpi ne, %17, %18 : vector<64x1xi32>
    %20 = arith.extui %19 : vector<64x1xi1> to vector<64x1xi32>
    %21 = arith.sitofp %20 : vector<64x1xi32> to vector<64x1xf32>
    %c15_i32 = arith.constant 15 : i32
    %22 = vector.broadcast %c15_i32 : i32 to vector<64x1xi32>
    %23 = arith.cmpi ne, %17, %22 : vector<64x1xi32>
    %24 = arith.extui %23 : vector<64x1xi1> to vector<64x1xi32>
    %25 = arith.sitofp %24 : vector<64x1xi32> to vector<64x1xf32>
    %c1_i32_5 = arith.constant 1 : i32
    %26 = tpu.dynamic_rotate %0 by %c1_i32_5 dim 0 : vector<64x4xf32>, i32 -> vector<64x4xf32>
    %27 = vector.broadcast %21 : vector<64x1xf32> to vector<64x4xf32>
    %28 = arith.mulf %26, %27 : vector<64x4xf32>
    %c63_i32 = arith.constant 63 : i32
    %29 = tpu.dynamic_rotate %0 by %c63_i32 dim 0 : vector<64x4xf32>, i32 -> vector<64x4xf32>
    %30 = vector.broadcast %25 : vector<64x1xf32> to vector<64x4xf32>
    %31 = arith.mulf %29, %30 : vector<64x4xf32>
    %c1 = arith.constant 1 : index
    %c0_6 = arith.constant 0 : index
    %c0_7 = arith.constant 0 : index
    %32 = vector.load %arg2[%c1, %c0_6, %c0_7] : memref<3x4x4xf32, #tpu.memory_space<vmem>>, vector<1x4x4xf32>
    %33 = vector.shape_cast %32 : vector<1x4x4xf32> to vector<4x4xf32>
    %cst = arith.constant dense<0.000000e+00> : vector<64x4xf32>
    %34 = tpu.matmul %0, %33, %cst {dimension_numbers = #tpu.dot_dimension_numbers<[1], [0], [0], [1], [0, 0, 1, 1], [], []>} : vector<64x4xf32>, vector<4x4xf32>, vector<64x4xf32> -> vector<64x4xf32>
    %c0_8 = arith.constant 0 : index
    %c0_9 = arith.constant 0 : index
    %c0_10 = arith.constant 0 : index
    %35 = vector.load %arg2[%c0_8, %c0_9, %c0_10] : memref<3x4x4xf32, #tpu.memory_space<vmem>>, vector<1x4x4xf32>
    %36 = vector.shape_cast %35 : vector<1x4x4xf32> to vector<4x4xf32>
    %cst_11 = arith.constant dense<0.000000e+00> : vector<64x4xf32>
    %37 = tpu.matmul %28, %36, %cst_11 {dimension_numbers = #tpu.dot_dimension_numbers<[1], [0], [0], [1], [0, 0, 1, 1], [], []>} : vector<64x4xf32>, vector<4x4xf32>, vector<64x4xf32> -> vector<64x4xf32>
    %38 = arith.addf %34, %37 : vector<64x4xf32>
    %c2 = arith.constant 2 : index
    %c0_12 = arith.constant 0 : index
    %c0_13 = arith.constant 0 : index
    %39 = vector.load %arg2[%c2, %c0_12, %c0_13] : memref<3x4x4xf32, #tpu.memory_space<vmem>>, vector<1x4x4xf32>
    %40 = vector.shape_cast %39 : vector<1x4x4xf32> to vector<4x4xf32>
    %cst_14 = arith.constant dense<0.000000e+00> : vector<64x4xf32>
    %41 = tpu.matmul %31, %40, %cst_14 {dimension_numbers = #tpu.dot_dimension_numbers<[1], [0], [0], [1], [0, 0, 1, 1], [], []>} : vector<64x4xf32>, vector<4x4xf32>, vector<64x4xf32> -> vector<64x4xf32>
    %42 = arith.addf %38, %41 : vector<64x4xf32>
    %c0_15 = arith.constant 0 : index
    %c0_16 = arith.constant 0 : index
    %43 = vector.load %arg3[%c0_15, %c0_16] : memref<1x4xf32, #tpu.memory_space<vmem>>, vector<1x4xf32>
    %44 = vector.broadcast %43 : vector<1x4xf32> to vector<64x4xf32>
    %45 = arith.addf %42, %44 : vector<64x4xf32>
    %cst_17 = arith.constant 5.000000e-01 : f32
    %46 = vector.broadcast %cst_17 : f32 to vector<64x4xf32>
    %47 = arith.mulf %46, %45 : vector<64x4xf32>
    %cst_18 = arith.constant 0.707106769 : f32
    %48 = vector.broadcast %cst_18 : f32 to vector<64x4xf32>
    %49 = arith.mulf %45, %48 : vector<64x4xf32>
    %50 = math.erf %49 : vector<64x4xf32>
    %cst_19 = arith.constant 1.000000e+00 : f32
    %51 = vector.broadcast %cst_19 : f32 to vector<64x4xf32>
    %52 = arith.addf %51, %50 : vector<64x4xf32>
    %53 = arith.mulf %47, %52 : vector<64x4xf32>
    %c1_i32_20 = arith.constant 1 : i32
    %54 = tpu.dynamic_rotate %53 by %c1_i32_20 dim 0 : vector<64x4xf32>, i32 -> vector<64x4xf32>
    %55 = vector.broadcast %21 : vector<64x1xf32> to vector<64x4xf32>
    %56 = arith.mulf %54, %55 : vector<64x4xf32>
    %c63_i32_21 = arith.constant 63 : i32
    %57 = tpu.dynamic_rotate %53 by %c63_i32_21 dim 0 : vector<64x4xf32>, i32 -> vector<64x4xf32>
    %58 = vector.broadcast %25 : vector<64x1xf32> to vector<64x4xf32>
    %59 = arith.mulf %57, %58 : vector<64x4xf32>
    %c1_22 = arith.constant 1 : index
    %c0_23 = arith.constant 0 : index
    %c0_24 = arith.constant 0 : index
    %60 = vector.load %arg4[%c1_22, %c0_23, %c0_24] : memref<3x4x4xf32, #tpu.memory_space<vmem>>, vector<1x4x4xf32>
    %61 = vector.shape_cast %60 : vector<1x4x4xf32> to vector<4x4xf32>
    %cst_25 = arith.constant dense<0.000000e+00> : vector<64x4xf32>
    %62 = tpu.matmul %53, %61, %cst_25 {dimension_numbers = #tpu.dot_dimension_numbers<[1], [0], [0], [1], [0, 0, 1, 1], [], []>} : vector<64x4xf32>, vector<4x4xf32>, vector<64x4xf32> -> vector<64x4xf32>
    %c0_26 = arith.constant 0 : index
    %c0_27 = arith.constant 0 : index
    %c0_28 = arith.constant 0 : index
    %63 = vector.load %arg4[%c0_26, %c0_27, %c0_28] : memref<3x4x4xf32, #tpu.memory_space<vmem>>, vector<1x4x4xf32>
    %64 = vector.shape_cast %63 : vector<1x4x4xf32> to vector<4x4xf32>
    %cst_29 = arith.constant dense<0.000000e+00> : vector<64x4xf32>
    %65 = tpu.matmul %56, %64, %cst_29 {dimension_numbers = #tpu.dot_dimension_numbers<[1], [0], [0], [1], [0, 0, 1, 1], [], []>} : vector<64x4xf32>, vector<4x4xf32>, vector<64x4xf32> -> vector<64x4xf32>
    %66 = arith.addf %62, %65 : vector<64x4xf32>
    %c2_30 = arith.constant 2 : index
    %c0_31 = arith.constant 0 : index
    %c0_32 = arith.constant 0 : index
    %67 = vector.load %arg4[%c2_30, %c0_31, %c0_32] : memref<3x4x4xf32, #tpu.memory_space<vmem>>, vector<1x4x4xf32>
    %68 = vector.shape_cast %67 : vector<1x4x4xf32> to vector<4x4xf32>
    %cst_33 = arith.constant dense<0.000000e+00> : vector<64x4xf32>
    %69 = tpu.matmul %59, %68, %cst_33 {dimension_numbers = #tpu.dot_dimension_numbers<[1], [0], [0], [1], [0, 0, 1, 1], [], []>} : vector<64x4xf32>, vector<4x4xf32>, vector<64x4xf32> -> vector<64x4xf32>
    %70 = arith.addf %66, %69 : vector<64x4xf32>
    %c0_34 = arith.constant 0 : index
    %c0_35 = arith.constant 0 : index
    %71 = vector.load %arg5[%c0_34, %c0_35] : memref<1x4xf32, #tpu.memory_space<vmem>>, vector<1x4xf32>
    %72 = vector.broadcast %71 : vector<1x4xf32> to vector<64x4xf32>
    %73 = arith.addf %70, %72 : vector<64x4xf32>
    %cst_36 = arith.constant 5.000000e-01 : f32
    %74 = vector.broadcast %cst_36 : f32 to vector<64x4xf32>
    %75 = arith.mulf %74, %73 : vector<64x4xf32>
    %cst_37 = arith.constant 0.707106769 : f32
    %76 = vector.broadcast %cst_37 : f32 to vector<64x4xf32>
    %77 = arith.mulf %73, %76 : vector<64x4xf32>
    %78 = math.erf %77 : vector<64x4xf32>
    %cst_38 = arith.constant 1.000000e+00 : f32
    %79 = vector.broadcast %cst_38 : f32 to vector<64x4xf32>
    %80 = arith.addf %79, %78 : vector<64x4xf32>
    %81 = arith.mulf %75, %80 : vector<64x4xf32>
    %82 = arith.addf %81, %0 : vector<64x4xf32>
    %c0_39 = arith.constant 0 : index
    %c0_40 = arith.constant 0 : index
    %83 = vector.load %arg6[%c0_39, %c0_40] : memref<64x4xf32, #tpu.memory_space<vmem>>, vector<64x4xf32>
    tpu.vector_store %arg6[%c0_39, %c0_40], %82 {strides = array<i32>} : memref<64x4xf32, #tpu.memory_space<vmem>>, vector<64x4xf32>,
    return
  }
  func.func @transform_0(%arg0: i32) -> (i32, i32) {
    %c0_i32 = arith.constant 0 : i32
    %c0_i32_0 = arith.constant 0 : i32
    return %arg0, %c0_i32 : i32, i32
  }
  func.func @transform_1(%arg0: i32) -> (i32, i32, i32) {
    %c0_i32 = arith.constant 0 : i32
    %c0_i32_0 = arith.constant 0 : i32
    %c0_i32_1 = arith.constant 0 : i32
    %c0_i32_2 = arith.constant 0 : i32
    return %c0_i32, %c0_i32_0, %c0_i32_1 : i32, i32, i32
  }
  func.func @transform_2(%arg0: i32) -> (i32, i32) {
    %c0_i32 = arith.constant 0 : i32
    %c0_i32_0 = arith.constant 0 : i32
    %c0_i32_1 = arith.constant 0 : i32
    return %c0_i32, %c0_i32_0 : i32, i32
  }
  func.func @transform_3(%arg0: i32) -> (i32, i32, i32) {
    %c0_i32 = arith.constant 0 : i32
    %c0_i32_0 = arith.constant 0 : i32
    %c0_i32_1 = arith.constant 0 : i32
    %c0_i32_2 = arith.constant 0 : i32
    return %c0_i32, %c0_i32_0, %c0_i32_1 : i32, i32, i32
  }
  func.func @transform_4(%arg0: i32) -> (i32, i32) {
    %c0_i32 = arith.constant 0 : i32
    %c0_i32_0 = arith.constant 0 : i32
    %c0_i32_1 = arith.constant 0 : i32
    return %c0_i32, %c0_i32_0 : i32, i32
  }
  func.func @transform_5(%arg0: i32) -> (i32, i32) {
    %c0_i32 = arith.constant 0 : i32
    %c0_i32_0 = arith.constant 0 : i32
    return %arg0, %c0_i32 : i32, i32
  }
}

</mosaic_0001>

<bundles_post_ra>
// kernel: tpu_custom_call.1
= control target key start
LH: loop header
LB: loop body
LE: loop exit
PB: predicated region body
PF: predicated region fallthrough
CT: control target
= control target key end

     0   :  { %s1908_s18 = smov 0   ;;  %s2706_s0 = inlined_call_operand.vmem [shape: f32[512,4], index: 0, kind: input, shape index: {}]   ;;  %s2707_s1 = inlined_call_operand.vmem [shape: f32[3,4,4], index: 1, kind: input, shape index: {}]   ;;  %s2708_s2 = inlined_call_operand.vmem [shape: f32[1,4], index: 2, kind: input, shape index: {}]   ;;  %s2709_s3 = inlined_call_operand.vmem [shape: f32[3,4,4], index: 3, kind: input, shape index: {}]   ;;  %s2710_s4 = inlined_call_operand.vmem [shape: f32[1,4], index: 4, kind: input, shape index: {}]   ;;  %s2711_s5 = inlined_call_operand.vmem [shape: f32[512,4], index: 5, kind: output, shape index: {}]  }
   0x1 LB: > { %s1723_s19 = sadd.s32 4294967295, %s1875_s18   ;;  %p1727_p0 = scmp.ge.s32.totalorder %s1875_s18, 1  ;;  %s1875_s18 = sphi %s1908_s18, %s15_s18  }
   0x2   : > { %p188_p1 = scmp.lt.s32.totalorder %s1875_s18, 9 }
   0x4   : > { %p189_p2 = pnand %p1727_p0, %p188_p1 }
   0x5   : > { %s1728_s24 = sshll.u32 (!%p189_p2), %s1723_s19, 3 }
   0x6   : > { %192 = sbr.rel (%p189_p2) target bundleno = 576 (0x240), region = 40  ;;  %p217_p3 = scmp.lt.s32.totalorder (!%p189_p2), %s1728_s24, 63 }
   0xb   : > { %v441_v0 = vld [vmem:[%s2707_s1] sm:$0xf]  ;;  %vm467_vm0 = vcmask 1043456   ;;  %v1740_v1 = vld [vmem:[%s2707_s1 + $0x4] sm:$0xf]  ;;  %v236_v2 = vlaneseq  ;;  %s2717_s24 = smov (!%p217_p3, %s1728_s24), 63 }
   0xc   : > { %1816 = vmatpush.msk.msra.mxu2 %vm467_vm0, %v441_v0  ;;  %1817 = vmatpush.msk.msra.mxu3 %vm467_vm0, %v1740_v1  ;;  %v1759_v3 = vld [vmem:[%s2707_s1 + $0x8] sm:$0xf]  ;;  %s1729_s27 = sshll.u32 %s2717_s24, 3  ;;  %vm442_vm1 = vcmask 31744   ;;  %v1877_v11 = vmov 0.0  }
   0xd   : > { %v1927_v4 = vshrl.u32 %v236_v2, 7  ;;  %1741 = vmatpush.msk.msra.mxu0 %vm467_vm0, %v441_v0  ;;  %1750 = vmatpush.msk.msra.mxu1 %vm467_vm0, %v1740_v1  ;;  %s1941_s30 = scalar_lea.vmem %s2706_s0, %s1729_s27  ;;  %s2555_s19 = scalar_lea.vmem %s2711_s5, %s1729_s27 }
   0xe   : > { %1760 = vmatpush.msk.msrb.mxu2 %vm467_vm0, %v1759_v3  ;;  %v1944_v7 = vld [vmem:[%s1941_s30 + $0x18] sm:$0xff]  ;;  %v1947_v8 = vld [vmem:[%s1941_s30 + $0x20] sm:$0xff]  ;;  %v1969_v17 = vld [vmem:[%s1941_s30 + $0x28] sm:$0xff] }
   0xf   : > { %v241_v5 = vadd.s32 32, %v1927_v4  ;;  %vm397_vm2 = vcmp.lt.s32.totalorder %v1927_v4, 1  ;;  %v392_v9 = vrot.slane %v1944_v7, 7  ;;  %v393_v10 = vrot.slane %v1947_v8, 7  ;;  %1755 = vmatmul.msk.f32.vlgmr.msra.gmra.mxu3 %vm442_vm1, %v1947_v8  ;;  %v1958_v13 = vld [vmem:[%s1941_s30 + $0x38] sm:$0xff]  ;;  %v1961_v14 = vld [vmem:[%s1941_s30] sm:$0xff] }
  0x10   : > { %1751 = vmatmul.msk.f32.vlgmr.msra.gmra.mxu1 %vm442_vm1, %v1961_v14  ;;  %v243_v18 = vadd.s32 48, %v1927_v4  ;;  %v396_v19 = vrot.slane %v1958_v13, 7  ;;  %v249_v20 = vand.u32 15, %v1927_v4  ;;  %v389_v21 = vrot.slane %v1961_v14, 7  ;;  %v1980_v24 = vld [vmem:[%s1941_s30 + $0x30] sm:$0xff]  ;;  %v229_v28 = vld [vmem:[%s1941_s30 + $0x8] sm:$0xff] }
  0x11   : > { %v277_v6 = vand.u32 15, %v241_v5  ;;  %v401_v15 = vsel %vm397_vm2, %v392_v9, %v393_v10  ;;  %v394_v22 = vrot.slane %v1969_v17, 7  ;;  %v395_v30 = vrot.slane %v1980_v24, 7  ;;  %v230_v36 = vld [vmem:[%s1941_s30 + $0x10] sm:$0xff] }
  0x12   : > { %vm341_vm4 = vcmp.ne.s32.totalorder %v249_v20, 0  ;;  %v405_v23 = vsel %vm397_vm2, %v396_v19, %v389_v21  ;;  %v291_v25 = vand.u32 15, %v243_v18  ;;  %v390_v31 = vrot.slane %v229_v28, 7 }
  0x13   : > { %vm345_vm3 = vcmp.ne.s32.totalorder %v277_v6, 0  ;;  %v1983_v26 = vsel %vm341_vm4, 1.0, %v1877_v11  ;;  %v400_v29 = vsel %vm397_vm2, %v393_v10, %v394_v22  ;;  %v399_v33 = vsel %vm397_vm2, %v394_v22, %v395_v30 }
  0x14   : > { %v1955_v12 = vsel %vm345_vm3, 1.0, %v1877_v11  ;;  %v406_v27 = vmul.f32 %v1983_v26, %v405_v23  ;;  %vm347_vm5 = vcmp.ne.s32.totalorder %v291_v25, 0  ;;  %v404_v34 = vsel %vm397_vm2, %v389_v21, %v390_v31 }
  0x15   : > { %v410_v16 = vmul.f32 %v1955_v12, %v401_v15  ;;  %v1996_v32 = vsel %vm347_vm5, 1.0, %v1877_v11  ;;  %v239_v37 = vadd.s32 16, %v1927_v4  ;;  %v391_v39 = vrot.slane %v230_v36, 7 }
  0x16   : > { %1742 = vmatmul.msk.f32.vlgmr.msra.gmra.mxu0 %vm442_vm1, %v406_v27  ;;  %v412_v35 = vmul.f32 %v1996_v32, %v399_v33  ;;  %v398_v43 = vsel %vm397_vm2, %v395_v30, %v396_v19  ;;  %v238_v44 = vadd.s32 8, %v1927_v4  ;;  %v414_v45 = vrot.slane %v1961_v14, 1 }
  0x17   : > { %1746 = vmatmul.msk.f32.vlgmr.msra.gmra.mxu2 %vm442_vm1, %v410_v16  ;;  %1756 = vmatmul.msk.f32.gmra.mxu3 %vm442_vm1, %v1969_v17  ;;  %v263_v38 = vand.u32 15, %v239_v37  ;;  %v403_v41 = vsel %vm397_vm2, %v390_v31, %v391_v39  ;;  %v415_v46 = vrot.slane %v229_v28, 1  ;;  %vm422_vm7 = vcmp.lt.s32.totalorder %v1927_v4, 7 }
  0x18   : > { %1752 = vmatmul.msk.f32.gmra.mxu1 %vm442_vm1, %v229_v28  ;;  %v256_v47 = vand.u32 15, %v238_v44  ;;  %v402_v48 = vsel %vm397_vm2, %v391_v39, %v392_v9  ;;  %v416_v50 = vrot.slane %v230_v36, 1  ;;  %v242_v51 = vadd.s32 40, %v1927_v4 }
  0x19   : > { %vm343_vm6 = vcmp.ne.s32.totalorder %v263_v38, 0  ;;  %v429_v49 = vsel %vm422_vm7, %v414_v45, %v415_v46  ;;  %v240_v57 = vadd.s32 24, %v1927_v4  ;;  %v417_v58 = vrot.slane %v1944_v7, 1 }
  0x1a   : > { %v2011_v40 = vsel %vm343_vm6, 1.0, %v1877_v11  ;;  %vm366_vm8 = vcmp.ne.s32.totalorder %v256_v47, 15  ;;  %v428_v53 = vsel %vm422_vm7, %v415_v46, %v416_v50  ;;  %v284_v54 = vand.u32 15, %v242_v51 }
  0x1b   : > { %v408_v42 = vmul.f32 %v2011_v40, %v403_v41  ;;  %v2035_v52 = vsel %vm366_vm8, 1.0, %v1877_v11  ;;  %v270_v59 = vand.u32 15, %v240_v57  ;;  %v427_v60 = vsel %vm422_vm7, %v416_v50, %v417_v58 }
  0x1c   : > { %v432_v55 = vmul.f32 %v2035_v52, %v428_v53  ;;  %vm370_vm9 = vcmp.ne.s32.totalorder %v284_v54, 15  ;;  %v418_v61 = vrot.slane %v1947_v8, 1  ;;  %v244_v62 = vadd.s32 56, %v1927_v4  ;;  %v2458_v4 = vld [vmem:[%s2710_s4] ss:$0 sm:$0xff] }
  0x1d   : > { %v2041_v56 = vsel %vm370_vm9, 1.0, %v1877_v11  ;;  %vm368_vm10 = vcmp.ne.s32.totalorder %v270_v59, 15  ;;  %v419_v5 = vrot.slane %v1969_v17, 1  ;;  %v421_v10 = vrot.slane %v1958_v13, 1 }
  0x1e   : > { %1743 = vmatmul.msk.f32.gmra.mxu0 %vm442_vm1, %v404_v34  ;;  %v2052_v63 = vsel %vm368_vm10, 1.0, %v1877_v11  ;;  %v426_v0 = vsel %vm422_vm7, %v417_v58, %v418_v61  ;;  %v298_v1 = vand.u32 15, %v244_v62 }
  0x1f   : > { %1747 = vmatmul.msk.f32.gmra.mxu2 %vm442_vm1, %v400_v29  ;;  %1757 = vmatmul.msk.f32.gmra.mxu3 %vm442_vm1, %v1980_v24  ;;  %v434_v2 = vmul.f32 %v2052_v63, %v426_v0  ;;  %v425_v6 = vsel %vm422_vm7, %v418_v61, %v419_v5  ;;  %v430_v14 = vsel %vm422_vm7, %v421_v10, %v414_v45 }
  0x20   : > { %1753 = vmatmul.msk.f32.gmra.mxu1 %vm442_vm1, %v230_v36  ;;  %vm372_vm11 = vcmp.ne.s32.totalorder %v298_v1, 15 }
  0x21   : > { %v2058_v3 = vsel %vm372_vm11, 1.0, %v1877_v11 }
  0x22   : > { %v438_v15 = vmul.f32 %v2058_v3, %v430_v14 }
  0x26   : > { %1744 = vmatmul.msk.f32.gmra.mxu0 %vm442_vm1, %v408_v42 }
  0x27   : > { %1748 = vmatmul.msk.f32.gmra.mxu2 %vm442_vm1, %v412_v35  ;;  %1758 = vmatmul.msk.f32.gmra.mxu3 %vm442_vm1, %v1958_v13 }
  0x28   : > { %1754 = vmatmul.msk.f32.gmra.mxu1 %vm442_vm1, %v1944_v7  ;;  %v420_v7 = vrot.slane %v1980_v24, 1  ;;  %v2089_v24 = vld [vmem:[%s2708_s2] ss:$0 sm:$0xff] }
  0x2a   : > { %v424_v8 = vsel %vm422_vm7, %v419_v5, %v420_v7  ;;  %v423_v11 = vsel %vm422_vm7, %v420_v7, %v421_v10 }
  0x2b   : > { %v436_v9 = vmul.f32 %v2041_v56, %v424_v8 }
  0x2e   : > { %1745 = vmatmul.msk.f32.gmra.mxu0 %vm442_vm1, %v402_v48 }
  0x2f   : > { %1749 = vmatmul.msk.f32.gmra.mxu2 %vm442_vm1, %v398_v43 }
  0x37   : > { %1761 = vmatmul.msk.f32.vlgmr.msrb.gmra.mxu2 %vm442_vm1, %v429_v49 }
  0x3f   : > { %1762 = vmatmul.msk.f32.gmra.mxu2 %vm442_vm1, %v432_v55 }
  0x47   : > { %1763 = vmatmul.msk.f32.gmra.mxu2 %vm442_vm1, %v427_v60 }
  0x4f   : > { %1764 = vmatmul.msk.f32.gmra.mxu2 %vm442_vm1, %v434_v2 }
  0x57   : > { %1765 = vmatmul.msk.f32.gmra.mxu2 %vm442_vm1, %v425_v6 }
  0x5f   : > { %1766 = vmatmul.msk.f32.gmra.mxu2 %vm442_vm1, %v436_v9 }
  0x67   : > { %1767 = vmatmul.msk.f32.gmra.mxu2 %vm442_vm1, %v423_v11 }
  0x6f   : > { %1768 = vmatmul.msk.f32.gmra.mxu2 %vm442_vm1, %v438_v15  ;;  %v1777_v15 = vld [vmem:[%s2709_s3 + $0x4] sm:$0xf] }
  0x70   : > { %1787 = vmatpush.msk.msrb.mxu0 %vm467_vm0, %v1777_v15 }
  0x8d   : > { %v556_v13 = vpop.f32.mrf.mxu1 }
  0x92   : > { %v568_v46 = vpop.f32.mrf.mxu3 }
  0x93   : > { %v488_v19 = vpop.f32.mrf.mxu0 }
  0x94   : > { %v557_v21 = vadd.f32 %v556_v13, %v488_v19 }
  0x95   : > { %v559_v23 = vpop.f32.mrf.mxu1 }
  0x9a   : > { %v2078_v16 = vpop.f32.mrf.mxu2  ;;  %v571_v13 = vpop.f32.mrf.mxu3 }
  0x9b   : > { %v491_v22 = vpop.f32.mrf.mxu0 }
  0x9c   : > { %v560_v30 = vadd.f32 %v559_v23, %v491_v22 }
  0x9d   : > { %v562_v35 = vpop.f32.mrf.mxu1 }
  0xa2   : > { %v2080_v17 = vpop.f32.mrf.mxu2 }
  0xa3   : > { %v494_v33 = vpop.f32.mrf.mxu0 }
  0xa4   : > { %v563_v44 = vadd.f32 %v562_v35, %v494_v33 }
  0xa5   : > { %v565_v58 = vpop.f32.mrf.mxu1 }
  0xaa   : > { %v2082_v18 = vpop.f32.mrf.mxu2 }
  0xab   : > { %v497_v57 = vpop.f32.mrf.mxu0 }
  0xac   : > { %v566_v5 = vadd.f32 %v565_v58, %v497_v57 }
  0xb2   : > { %v2084_v20 = vpop.f32.mrf.mxu2 }
  0xba   : > { %v626_v25 = vpop.f32.mrf.mxu2 }
  0xbb   : > { %v650_v27 = vadd.f32 %v626_v25, %v557_v21 }
  0xbd   : > { %v2092_v28 = vadd.f32 %v2089_v24, %v650_v27 }
  0xbf   : > { %v2095_v29 = vmul.f32 0.70710677, %v2092_v28 }
  0xc1   : > { %v686_v31 = vmul.f32 %v2095_v29, %v2095_v29 }
  0xc2   : > { %v629_v34 = vpop.f32.mrf.mxu2 }
  0xc3   : > { %v2099_v36 = vmin.f32 %v686_v31, 16.0  ;;  %v651_v37 = vadd.f32 %v629_v34, %v560_v30 }
  0xc5   : > { %v688_v38 = vmul.f32 2.1237322e-06, %v2099_v36  ;;  %v699_v39 = vmul.f32 3.8918573e-05, %v2099_v36  ;;  %v2104_v41 = vadd.f32 %v2089_v24, %v651_v37 }
  0xc7   : > { %v689_v42 = vadd.f32 0.00028619796, %v688_v38  ;;  %v700_v43 = vadd.f32 0.001143296, %v699_v39  ;;  %v2107_v45 = vmul.f32 0.70710677, %v2104_v41 }
  0xc9   : > { %v690_v47 = vmul.f32 %v689_v42, %v2099_v36  ;;  %v701_v48 = vmul.f32 %v700_v43, %v2099_v36  ;;  %v726_v49 = vmul.f32 %v2107_v45, %v2107_v45 }
  0xca   : > { %v632_v50 = vpop.f32.mrf.mxu2 }
  0xcb   : > { %v691_v51 = vadd.f32 0.0036580483, %v690_v47  ;;  %v702_v53 = vadd.f32 0.014752088, %v701_v48  ;;  %v652_v54 = vadd.f32 %v632_v50, %v563_v44  ;;  %v2113_v55 = vmin.f32 %v726_v49, 16.0 }
  0xcc   : > { %v569_v48 = vadd.f32 %v568_v46, %v2078_v16 }
  0xcd   : > { %v692_v59 = vmul.f32 %v691_v51, %v2099_v36  ;;  %v703_v60 = vmul.f32 %v702_v53, %v2099_v36  ;;  %v2118_v61 = vadd.f32 %v2089_v24, %v652_v54  ;;  %v728_v62 = vmul.f32 2.1237322e-06, %v2113_v55 }
  0xce   : > { %v739_v0 = vmul.f32 3.8918573e-05, %v2113_v55 }
  0xcf   : > { %v693_v1 = vadd.f32 0.05243302, %v692_v59  ;;  %v704_v2 = vadd.f32 0.112945676, %v703_v60  ;;  %v729_v6 = vadd.f32 0.00028619796, %v728_v62 }
  0xd0   : > { %v2123_v7 = vmul.f32 0.70710677, %v2118_v61  ;;  %v740_v8 = vadd.f32 0.001143296, %v739_v0  ;;  %v574_v0 = vpop.f32.mrf.mxu3 }
  0xd1   : > { %v705_v9 = vmul.f32 %v704_v2, %v2099_v36  ;;  %v730_v10 = vmul.f32 %v729_v6, %v2113_v55  ;;  %v694_v23 = vmul.f32 %v693_v1, %v2099_v36 }
  0xd2   : > { %v766_v11 = vmul.f32 %v2123_v7, %v2123_v7  ;;  %v635_v14 = vpop.f32.mrf.mxu2  ;;  %v741_v19 = vmul.f32 %v740_v8, %v2113_v55 }
  0xd3   : > { %v706_v21 = vadd.f32 0.4994258, %v705_v9  ;;  %v653_v22 = vadd.f32 %v635_v14, %v566_v5  ;;  %v731_v25 = vadd.f32 0.0036580483, %v730_v10  ;;  %v695_v43 = vadd.f32 0.18741608, %v694_v23 }
  0xd4   : > { %v2135_v27 = vmin.f32 %v766_v11, 16.0  ;;  %v742_v30 = vadd.f32 0.014752088, %v741_v19  ;;  %v572_v11 = vadd.f32 %v571_v13, %v2080_v17  ;;  %v575_v14 = vadd.f32 %v574_v0, %v2082_v18 }
  0xd5   : > { %v707_v31 = vmul.f32 %v706_v21, %v2099_v36  ;;  %v2139_v33 = vadd.f32 %v2089_v24, %v653_v22  ;;  %v732_v34 = vmul.f32 %v731_v25, %v2113_v55  ;;  %v696_v59 = vmul.f32 %v695_v43, %v2099_v36  ;;  %v1796_v21 = vld [vmem:[%s2709_s3 + $0x8] sm:$0xf] }
  0xd6   : > { %v768_v35 = vmul.f32 2.1237322e-06, %v2135_v27  ;;  %v743_v37 = vmul.f32 %v742_v30, %v2113_v55  ;;  %v779_v42 = vmul.f32 3.8918573e-05, %v2135_v27  ;;  %1797 = vmatpush.msk.msrb.mxu1 %vm467_vm0, %v1796_v21 }
  0xd7   : > { %v2144_v38 = vadd.f32 1.0, %v707_v31  ;;  %v2147_v39 = vmul.f32 0.70710677, %v2139_v33  ;;  %v733_v49 = vadd.f32 0.05243302, %v732_v34 }
  0xd8   : > { %v769_v44 = vadd.f32 0.00028619796, %v768_v35  ;;  %v744_v47 = vadd.f32 0.112945676, %v743_v37  ;;  %v780_v58 = vadd.f32 0.001143296, %v779_v42 }
  0xd9   : > { %1829 = vrcp.f32 %v2144_v38  ;;  %v806_v51 = vmul.f32 %v2147_v39, %v2147_v39  ;;  %v734_v2 = vmul.f32 %v733_v49, %v2113_v55  ;;  %v697_v15 = vadd.f32 1.1283791, %v696_v59 }
  0xda   : > { %v770_v50 = vmul.f32 %v769_v44, %v2135_v27  ;;  %v638_v53 = vpop.f32.mrf.mxu2  ;;  %v745_v57 = vmul.f32 %v744_v47, %v2113_v55  ;;  %v781_v1 = vmul.f32 %v780_v58, %v2135_v27  ;;  %v720_v22 = vand.u32 2147483648, %v2144_v38 }
  0xdb   : > { %v654_v54 = vadd.f32 %v638_v53, %v569_v48  ;;  %v2157_v62 = vmin.f32 %v806_v51, 16.0  ;;  %v735_v13 = vadd.f32 0.18741608, %v734_v2  ;;  %vm714_vm12 = vweird.f32 %v2144_v38 }
  0xdc   : > { %v771_v60 = vadd.f32 0.0036580483, %v770_v50  ;;  %v746_v46 = vadd.f32 0.4994258, %v745_v57  ;;  %v782_v10 = vadd.f32 0.014752088, %v781_v1  ;;  %v698_v0 = vmul.f32 %v697_v15, %v2095_v29 }
  0xdd   : > { %v2160_v16 = vadd.f32 %v2089_v24, %v654_v54  ;;  %v808_v6 = vmul.f32 2.1237322e-06, %v2157_v62  ;;  %v718_v44 = vand.u32 2147483647, %v2144_v38  ;;  %v819_v50 = vmul.f32 3.8918573e-05, %v2157_v62 }
  0xde   : > { %v772_v5 = vmul.f32 %v771_v60, %v2135_v27  ;;  %v747_v36 = vmul.f32 %v746_v46, %v2113_v55  ;;  %v783_v34 = vmul.f32 %v782_v10, %v2135_v27  ;;  %v736_v53 = vmul.f32 %v735_v13, %v2113_v55 }
  0xdf   : > { %v1830_v8 = vpop.eup %1829  ;;  %v2167_v9 = vmul.f32 0.70710677, %v2160_v16  ;;  %v809_v23 = vadd.f32 0.00028619796, %v808_v6  ;;  %v670_v58 = vmul.f32 0.5, %v2092_v28  ;;  %v721_v59 = vor.u32 1.1754944e-38, %v720_v22 }
  0xe0   : > { %v710_v19 = vmul.f32 %v1830_v8, %v2144_v38  ;;  %v2179_v30 = vadd.f32 1.0, %v747_v36  ;;  %v773_v18 = vadd.f32 0.05243302, %v772_v5  ;;  %vm715_vm13 = vweird.f32 %v1830_v8 }
  0xe1   : > { %v846_v25 = vmul.f32 %v2167_v9, %v2167_v9  ;;  %v810_v35 = vmul.f32 %v809_v23, %v2157_v62  ;;  %v784_v57 = vadd.f32 0.112945676, %v783_v34  ;;  %vm716_vm14 = vmor %vm714_vm12, %vm715_vm13  ;;  %vm719_vm15 = vcmp.eq.f32.partialorder %v718_v44, 8.507059e+37 }
  0xe2   : > { %v711_v17 = vsub.f32 1.0, %v710_v19  ;;  %v641_v31 = vpop.f32.mrf.mxu2  ;;  %1831 = vrcp.f32 %v2179_v30  ;;  %v774_v54 = vmul.f32 %v773_v18, %v2135_v27  ;;  %v820_v28 = vadd.f32 0.001143296, %v819_v50 }
  0xe3   : > { %v2184_v37 = vmin.f32 %v846_v25, 16.0  ;;  %v655_v42 = vadd.f32 %v641_v31, %v572_v11  ;;  %v811_v47 = vadd.f32 0.0036580483, %v810_v35  ;;  %v785_v1 = vmul.f32 %v784_v57, %v2135_v27  ;;  %v577_v35 = vpop.f32.mrf.mxu3 }
  0xe4   : > { %v712_v43 = vmul.f32 %v1830_v8, %v711_v17  ;;  %v737_v10 = vadd.f32 1.1283791, %v736_v53  ;;  %v775_v11 = vadd.f32 0.18741608, %v774_v54  ;;  %vm754_vm3 = vweird.f32 %v2179_v30 }
  0xe5   : > { %v848_v48 = vmul.f32 2.1237322e-06, %v2184_v37  ;;  %v2191_v49 = vadd.f32 %v2089_v24, %v655_v42  ;;  %v812_v38 = vmul.f32 %v811_v47, %v2157_v62  ;;  %v760_v25 = vand.u32 2147483648, %v2179_v30 }
  0xe6   : > { %v713_v51 = vadd.f32 %v1830_v8, %v712_v43  ;;  %v786_v17 = vadd.f32 0.4994258, %v785_v1  ;;  %v821_v34 = vmul.f32 %v820_v28, %v2157_v62  ;;  %v776_v44 = vmul.f32 %v775_v11, %v2135_v27 }
  0xe7   : > { %v2199_v60 = vmul.f32 0.70710677, %v2191_v49  ;;  %v849_v5 = vadd.f32 0.00028619796, %v848_v48  ;;  %v813_v22 = vadd.f32 0.05243302, %v812_v38 }
  0xe8   : > { %v717_v46 = vsel %vm716_vm14, %v1830_v8, %v713_v51  ;;  %v1832_v2 = vpop.eup %1831  ;;  %v758_v50 = vand.u32 2147483647, %v2179_v30 }
  0xe9   : > { %v722_v55 = vsel %vm719_vm15, %v721_v59, %v717_v46  ;;  %v886_v6 = vmul.f32 %v2199_v60, %v2199_v60  ;;  %v750_v21 = vmul.f32 %v1832_v2, %v2179_v30  ;;  %v850_v13 = vmul.f32 %v849_v5, %v2184_v37 }
  0xea   : > { %v723_v36 = vmul.f32 %v722_v55, %v698_v0  ;;  %v644_v19 = vpop.f32.mrf.mxu2  ;;  %vm755_vm4 = vweird.f32 %v1832_v2  ;;  %v814_v47 = vmul.f32 %v813_v22, %v2157_v62  ;;  %v578_v59 = vadd.f32 %v577_v35, %v2084_v20 }
  0xeb   : > { %v2206_v23 = vmin.f32 %v886_v6, 16.0  ;;  %v656_v29 = vadd.f32 %v644_v19, %v575_v14  ;;  %v751_v15 = vsub.f32 1.0, %v750_v21  ;;  %v787_v14 = vmul.f32 %v786_v17, %v2135_v27  ;;  %vm756_vm5 = vmor %vm754_vm3, %vm755_vm4 }
  0xec   : > { %v1769_v8 = vclamps-f32 %v723_v36, 1.0  ;;  %v851_v38 = vadd.f32 0.0036580483, %v850_v13  ;;  %v822_v27 = vadd.f32 0.014752088, %v821_v34  ;;  %v761_v55 = vor.u32 1.1754944e-38, %v760_v25 }
  0xed   : > { %v888_v18 = vmul.f32 2.1237322e-06, %v2206_v23  ;;  %v2213_v31 = vadd.f32 %v2089_v24, %v656_v29  ;;  %v752_v43 = vmul.f32 %v1832_v2, %v751_v15  ;;  %v2225_v57 = vadd.f32 1.0, %v787_v14 }
  0xee   : > { %v1006_v42 = vadd.f32 1.0, %v1769_v8  ;;  %v738_v5 = vmul.f32 %v737_v10, %v2107_v45  ;;  %v777_v6 = vadd.f32 1.1283791, %v776_v44  ;;  %vm759_vm6 = vcmp.eq.f32.partialorder %v758_v50, 8.507059e+37 }
  0xef   : > { %v889_v48 = vadd.f32 0.00028619796, %v888_v18  ;;  %v2223_v53 = vmul.f32 0.70710677, %v2213_v31  ;;  %v753_v54 = vadd.f32 %v1832_v2, %v752_v43  ;;  %v815_v28 = vadd.f32 0.18741608, %v814_v47 }
  0xf0   : > { %v2220_v51 = vmul.f32 %v1006_v42, %v670_v58  ;;  %1833 = vrcp.f32 %v2225_v57  ;;  %v852_v11 = vmul.f32 %v851_v38, %v2184_v37  ;;  %v671_v29 = vmul.f32 0.5, %v2104_v41 }
  0xf1   : > { %v890_v0 = vmul.f32 %v889_v48, %v2206_v23  ;;  %v926_v46 = vmul.f32 %v2223_v53, %v2223_v53  ;;  %v757_v1 = vsel %vm756_vm5, %v1832_v2, %v753_v54  ;;  %v823_v2 = vmul.f32 %v822_v27, %v2157_v62 }
  0xf2   : > { %v647_v58 = vpop.f32.mrf.mxu2  ;;  %1788 = vmatmul.msk.f32.vlgmr.msrb.gmra.mxu0 %vm442_vm1, %v2220_v51  ;;  %v762_v36 = vsel %vm759_vm6, %v761_v55, %v757_v1  ;;  %v778_v8 = vmul.f32 %v777_v6, %v2123_v7  ;;  %v816_v25 = vmul.f32 %v815_v28, %v2157_v62  ;;  %v853_v17 = vadd.f32 0.05243302, %v852_v11 }
  0xf3   : > { %v657_v20 = vadd.f32 %v647_v58, %v578_v59  ;;  %v2236_v30 = vmin.f32 %v926_v46, 16.0  ;;  %v763_v21 = vmul.f32 %v762_v36, %v738_v5  ;;  %v891_v22 = vadd.f32 0.0036580483, %v890_v0  ;;  %v1072_v0 = vld [vmem:[%s2709_s3] sm:$0xf] }
  0xf4   : > { %v859_v42 = vmul.f32 3.8918573e-05, %v2184_v37  ;;  %v899_v43 = vmul.f32 3.8918573e-05, %v2206_v23  ;;  %v1046_v41 = vrot.slane %v2220_v51, 1  ;;  %v800_v48 = vand.u32 2147483648, %v2225_v57  ;;  %1778 = vmatpush.msk.msrb.mxu3 %vm467_vm0, %v1072_v0 }
  0xf5   : > { %v2241_v19 = vadd.f32 %v2089_v24, %v657_v20  ;;  %v928_v45 = vmul.f32 2.1237322e-06, %v2236_v30  ;;  %v1770_v10 = vclamps-f32 %v763_v21, 1.0  ;;  %v824_v24 = vadd.f32 0.112945676, %v823_v2 }
  0xf6   : > { %v1834_v18 = vpop.eup %1833  ;;  %v892_v34 = vmul.f32 %v891_v22, %v2206_v23  ;;  %v798_v44 = vand.u32 2147483647, %v2225_v57  ;;  %v860_v54 = vadd.f32 0.001143296, %v859_v42  ;;  %v854_v59 = vmul.f32 %v853_v17, %v2184_v37 }
  0xf7   : > { %v2248_v15 = vmul.f32 0.70710677, %v2241_v19  ;;  %v1007_v13 = vadd.f32 1.0, %v1770_v10  ;;  %v929_v35 = vadd.f32 0.00028619796, %v928_v45  ;;  %v790_v7 = vmul.f32 %v1834_v18, %v2225_v57 }
  0xf8   : > { %v825_v50 = vmul.f32 %v824_v24, %v2157_v62  ;;  %v900_v46 = vadd.f32 0.001143296, %v899_v43  ;;  %v893_v58 = vadd.f32 0.05243302, %v892_v34  ;;  %v861_v5 = vmul.f32 %v860_v54, %v2184_v37 }
  0xf9   : > { %v2254_v14 = vmul.f32 %v1007_v13, %v671_v29  ;;  %v966_v47 = vmul.f32 %v2248_v15, %v2248_v15  ;;  %v791_v27 = vsub.f32 1.0, %v790_v7  ;;  %v930_v1 = vmul.f32 %v929_v35, %v2236_v30 }
  0xfa   : > { %v826_v55 = vadd.f32 0.4994258, %v825_v50  ;;  %vm795_vm8 = vweird.f32 %v1834_v18  ;;  %v901_v28 = vmul.f32 %v900_v46, %v2206_v23  ;;  %vm794_vm9 = vweird.f32 %v2225_v57 }
  0xfb   : > { %1789 = vmatmul.msk.f32.gmra.mxu0 %vm442_vm1, %v2254_v14  ;;  %v1047_v38 = vrot.slane %v2254_v14, 1  ;;  %v792_v20 = vmul.f32 %v1834_v18, %v791_v27  ;;  %v2280_v36 = vmin.f32 %v966_v47, 16.0  ;;  %v862_v21 = vadd.f32 0.014752088, %v861_v5  ;;  %vm796_vm0 = vmor %vm794_vm9, %vm795_vm8 }
  0xfc   : > { %v827_v11 = vmul.f32 %v826_v55, %v2157_v62  ;;  %v801_v22 = vor.u32 1.1754944e-38, %v800_v48  ;;  %v902_v45 = vadd.f32 0.014752088, %v901_v28  ;;  %v939_v10 = vmul.f32 3.8918573e-05, %v2236_v30 }
  0xfd   : > { %v1060_v6 = vsel %vm422_vm7, %v1046_v41, %v1047_v38  ;;  %v793_v2 = vadd.f32 %v1834_v18, %v792_v20  ;;  %v894_v29 = vmul.f32 %v893_v58, %v2206_v23  ;;  %v931_v17 = vadd.f32 0.0036580483, %v930_v1 }
  0xfe   : > { %1798 = vmatmul.msk.f32.vlgmr.msrb.gmra.mxu1 %vm442_vm1, %v1060_v6  ;;  %v2287_v13 = vadd.f32 1.0, %v827_v11  ;;  %v863_v24 = vmul.f32 %v862_v21, %v2184_v37  ;;  %vm799_vm10 = vcmp.eq.f32.partialorder %v798_v44, 8.507059e+37  ;;  %v903_v57 = vmul.f32 %v902_v45, %v2206_v23 }
  0xff   : > { %v797_v34 = vsel %vm796_vm0, %v1834_v18, %v793_v2  ;;  %v940_v35 = vadd.f32 0.001143296, %v939_v10  ;;  %v968_v62 = vmul.f32 2.1237322e-06, %v2280_v36  ;;  %v855_v43 = vadd.f32 0.18741608, %v854_v59 }
 0x100   : > { %v802_v42 = vsel %vm799_vm10, %v801_v22, %v797_v34  ;;  %1835 = vrcp.f32 %v2287_v13  ;;  %v979_v47 = vmul.f32 3.8918573e-05, %v2280_v36  ;;  %v895_v48 = vadd.f32 0.18741608, %v894_v29 }
 0x101   : > { %v803_v7 = vmul.f32 %v802_v42, %v778_v8  ;;  %v932_v50 = vmul.f32 %v931_v17, %v2236_v30  ;;  %v864_v54 = vadd.f32 0.112945676, %v863_v24  ;;  %v904_v27 = vadd.f32 0.112945676, %v903_v57 }
 0x102   : > { %v672_v18 = vmul.f32 0.5, %v2118_v61  ;;  %v817_v44 = vadd.f32 1.1283791, %v816_v25  ;;  %v941_v46 = vmul.f32 %v940_v35, %v2236_v30  ;;  %v1022_v58 = vrot.slane %v2220_v51, 7 }
 0x103   : > { %v1771_v0 = vclamps-f32 %v803_v7, 1.0  ;;  %v969_v1 = vadd.f32 0.00028619796, %v968_v62  ;;  %v865_v55 = vmul.f32 %v864_v54, %v2184_v37  ;;  %v905_v8 = vmul.f32 %v904_v27, %v2206_v23 }
 0x104   : > { %v856_v59 = vmul.f32 %v855_v43, %v2184_v37  ;;  %v942_v6 = vadd.f32 0.014752088, %v941_v46  ;;  %v980_v20 = vadd.f32 0.001143296, %v979_v47  ;;  %v896_v11 = vmul.f32 %v895_v48, %v2206_v23 }
 0x105   : > { %v1008_v5 = vadd.f32 1.0, %v1771_v0  ;;  %v933_v61 = vadd.f32 0.05243302, %v932_v50  ;;  %v866_v25 = vadd.f32 0.4994258, %v865_v55  ;;  %v1023_v10 = vrot.slane %v2254_v14, 7 }
 0x106   : > { %v1836_v28 = vpop.eup %1835  ;;  %v906_v21 = vadd.f32 0.4994258, %v905_v8  ;;  %v943_v45 = vmul.f32 %v942_v6, %v2236_v30  ;;  %v970_v29 = vmul.f32 %v969_v1, %v2280_v36  ;;  %v981_v34 = vmul.f32 %v980_v20, %v2280_v36 }
 0x107   : > { %v2302_v2 = vmul.f32 %v1008_v5, %v672_v18  ;;  %v830_v22 = vmul.f32 %v1836_v28, %v2287_v13  ;;  %v867_v17 = vmul.f32 %v866_v25, %v2184_v37  ;;  %v838_v62 = vand.u32 2147483647, %v2287_v13 }
 0x108   : > { %v907_v24 = vmul.f32 %v906_v21, %v2206_v23  ;;  %v944_v42 = vadd.f32 0.112945676, %v943_v45  ;;  %vm835_vm11 = vweird.f32 %v1836_v28  ;;  %v840_v43 = vand.u32 2147483648, %v2287_v13 }
 0x109   : > { %v1048_v57 = vrot.slane %v2302_v2, 1  ;;  %1790 = vmatmul.msk.f32.gmra.mxu0 %vm442_vm1, %v2302_v2  ;;  %v831_v35 = vsub.f32 1.0, %v830_v22  ;;  %v2316_v7 = vadd.f32 1.0, %v867_v17  ;;  %v2333_v50 = vsel %vm397_vm2, %v1022_v58, %v1023_v10 }
 0x10a   : > { %v2318_v47 = vadd.f32 1.0, %v907_v24  ;;  %v945_v48 = vmul.f32 %v944_v42, %v2236_v30  ;;  %v934_v54 = vmul.f32 %v933_v61, %v2236_v30  ;;  %v982_v18 = vadd.f32 0.014752088, %v981_v34 }
 0x10b   : > { %v1059_v37 = vsel %vm422_vm7, %v1047_v38, %v1048_v57  ;;  %v832_v23 = vmul.f32 %v1836_v28, %v831_v35  ;;  %1837 = vrcp.f32 %v2316_v7  ;;  %v971_v0 = vadd.f32 0.0036580483, %v970_v29 }
 0x10c   : > { %v1063_v27 = vmul.f32 %v2035_v52, %v1059_v37  ;;  %vm834_vm12 = vweird.f32 %v2287_v13  ;;  %1839 = vrcp.f32 %v2318_v47  ;;  %v818_v46 = vmul.f32 %v817_v44, %v2147_v39 }
 0x10d   : > { %v833_v38 = vadd.f32 %v1836_v28, %v832_v23  ;;  %vm836_vm13 = vmor %vm834_vm12, %vm835_vm11  ;;  %v841_v1 = vor.u32 1.1754944e-38, %v840_v43  ;;  %v857_v55 = vadd.f32 1.1283791, %v856_v59  ;;  %vm839_vm14 = vcmp.eq.f32.partialorder %v838_v62, 8.507059e+37 }
 0x10e   : > { %1799 = vmatmul.msk.f32.gmra.mxu1 %vm442_vm1, %v1063_v27  ;;  %v946_v52 = vadd.f32 0.4994258, %v945_v48  ;;  %v897_v5 = vadd.f32 1.1283791, %v896_v11  ;;  %v935_v6 = vadd.f32 0.18741608, %v934_v54  ;;  %v983_v61 = vmul.f32 %v982_v18, %v2280_v36 }
 0x10f   : > { %v837_v8 = vsel %vm836_vm13, %v1836_v28, %v833_v38  ;;  %v972_v13 = vmul.f32 %v971_v0, %v2280_v36  ;;  %v673_v44 = vmul.f32 0.5, %v2139_v33  ;;  %v858_v59 = vmul.f32 %v857_v55, %v2167_v9 }
 0x110   : > { %v842_v20 = vsel %vm839_vm14, %v841_v1, %v837_v8  ;;  %v947_v21 = vmul.f32 %v946_v52, %v2236_v30  ;;  %v984_v22 = vadd.f32 0.112945676, %v983_v61  ;;  %v898_v17 = vmul.f32 %v897_v5, %v2199_v60 }
 0x111   : > { %v843_v25 = vmul.f32 %v842_v20, %v818_v46  ;;  %v1838_v39 = vpop.eup %1837  ;;  %v936_v24 = vmul.f32 %v935_v6, %v2236_v30  ;;  %v973_v62 = vadd.f32 0.05243302, %v972_v13  ;;  %v878_v9 = vand.u32 2147483647, %v2316_v7 }
 0x112   : > { %v1840_v45 = vpop.eup %1839  ;;  %v870_v29 = vmul.f32 %v1838_v39, %v2316_v7  ;;  %v2349_v11 = vadd.f32 1.0, %v947_v21  ;;  %v985_v35 = vmul.f32 %v984_v22, %v2280_v36  ;;  %v880_v43 = vand.u32 2147483648, %v2316_v7 }
 0x113   : > { %v1772_v28 = vclamps-f32 %v843_v25, 1.0  ;;  %v910_v34 = vmul.f32 %v1840_v45, %v2318_v47  ;;  %vm875_vm15 = vweird.f32 %v1838_v39  ;;  %v920_v30 = vand.u32 2147483648, %v2318_v47 }
 0x114   : > { %v871_v33 = vsub.f32 1.0, %v870_v29  ;;  %1841 = vrcp.f32 %v2349_v11  ;;  %v986_v23 = vadd.f32 0.4994258, %v985_v35  ;;  %vm915_vm3 = vweird.f32 %v1840_v45 }
 0x115   : > { %v1009_v42 = vadd.f32 1.0, %v1772_v28  ;;  %v911_v37 = vsub.f32 1.0, %v910_v34  ;;  %v918_v27 = vand.u32 2147483647, %v2318_v47  ;;  %v974_v0 = vmul.f32 %v973_v62, %v2280_v36 }
 0x116   : > { %v872_v60 = vmul.f32 %v1838_v39, %v871_v33  ;;  %v987_v18 = vmul.f32 %v986_v23, %v2280_v36  ;;  %vm874_vm4 = vweird.f32 %v2316_v7  ;;  %v881_v1 = vor.u32 1.1754944e-38, %v880_v43 }
 0x117   : > { %v2358_v48 = vmul.f32 %v1009_v42, %v673_v44  ;;  %v912_v54 = vmul.f32 %v1840_v45, %v911_v37  ;;  %vm876_vm5 = vmor %vm874_vm4, %vm875_vm15  ;;  %vm914_vm6 = vweird.f32 %v2318_v47  ;;  %vm879_vm8 = vcmp.eq.f32.partialorder %v878_v9, 8.507059e+37 }
 0x118   : > { %v873_v46 = vadd.f32 %v1838_v39, %v872_v60  ;;  %v2369_v8 = vadd.f32 1.0, %v987_v18  ;;  %vm916_vm9 = vmor %vm914_vm6, %vm915_vm3  ;;  %v921_v20 = vor.u32 1.1754944e-38, %v920_v30  ;;  %vm919_vm0 = vcmp.eq.f32.partialorder %v918_v27, 8.507059e+37 }
 0x119   : > { %1791 = vmatmul.msk.f32.gmra.mxu0 %vm442_vm1, %v2358_v48  ;;  %v1049_v38 = vrot.slane %v2358_v48, 1  ;;  %v913_v55 = vadd.f32 %v1840_v45, %v912_v54  ;;  %v975_v13 = vadd.f32 0.18741608, %v974_v0  ;;  %v960_v28 = vand.u32 2147483648, %v2349_v11 }
 0x11a   : > { %v1842_v52 = vpop.eup %1841  ;;  %v877_v6 = vsel %vm876_vm5, %v1838_v39, %v873_v46  ;;  %1843 = vrcp.f32 %v2369_v8  ;;  %v958_v35 = vand.u32 2147483647, %v2349_v11  ;;  %vm954_vm11 = vweird.f32 %v2349_v11 }
 0x11b   : > { %v1058_v5 = vsel %vm422_vm7, %v1048_v57, %v1049_v38  ;;  %v882_v7 = vsel %vm879_vm8, %v881_v1, %v877_v6  ;;  %v917_v61 = vsel %vm916_vm9, %v1840_v45, %v913_v55  ;;  %v950_v47 = vmul.f32 %v1842_v52, %v2349_v11 }
 0x11c   : > { %1800 = vmatmul.msk.f32.gmra.mxu1 %vm442_vm1, %v1058_v5  ;;  %v883_v25 = vmul.f32 %v882_v7, %v858_v59  ;;  %v922_v21 = vsel %vm919_vm0, %v921_v20, %v917_v61  ;;  %v937_v57 = vadd.f32 1.1283791, %v936_v24  ;;  %vm955_vm10 = vweird.f32 %v1842_v52 }
 0x11d   : > { %v923_v44 = vmul.f32 %v922_v21, %v898_v17  ;;  %v951_v22 = vsub.f32 1.0, %v950_v47  ;;  %v674_v45 = vmul.f32 0.5, %v2160_v16  ;;  %v976_v62 = vmul.f32 %v975_v13, %v2280_v36  ;;  %vm956_vm12 = vmor %vm954_vm11, %vm955_vm10 }
 0x11e   : > { %v1773_v39 = vclamps-f32 %v883_v25, 1.0  ;;  %v675_v59 = vmul.f32 0.5, %v2191_v49  ;;  %v938_v24 = vmul.f32 %v937_v57, %v2223_v53  ;;  %v961_v37 = vor.u32 1.1754944e-38, %v960_v28 }
 0x11f   : > { %v1774_v29 = vclamps-f32 %v923_v44, 1.0  ;;  %v952_v34 = vmul.f32 %v1842_v52, %v951_v22  ;;  %vm959_vm13 = vcmp.eq.f32.partialorder %v958_v35, 8.507059e+37  ;;  %v977_v36 = vadd.f32 1.1283791, %v976_v62 }
 0x120   : > { %v1010_v42 = vadd.f32 1.0, %v1773_v39  ;;  %v1844_v17 = vpop.eup %1843  ;;  %v998_v11 = vand.u32 2147483647, %v2369_v8  ;;  %v1000_v1 = vand.u32 2147483648, %v2369_v8  ;;  %v676_v7 = vmul.f32 0.5, %v2213_v31 }
 0x121   : > { %v1011_v33 = vadd.f32 1.0, %v1774_v29  ;;  %v953_v9 = vadd.f32 %v1842_v52, %v952_v34  ;;  %v990_v16 = vmul.f32 %v1844_v17, %v2369_v8  ;;  %vm995_vm14 = vweird.f32 %v1844_v17 }
 0x122   : > { %v2386_v43 = vmul.f32 %v1010_v42, %v674_v45  ;;  %vm994_vm15 = vweird.f32 %v2369_v8  ;;  %vm999_vm4 = vcmp.eq.f32.partialorder %v998_v11, 8.507059e+37  ;;  %v677_v28 = vmul.f32 0.5, %v2241_v19 }
 0x123   : > { %v1019_v23 = vmul.f32 %v1011_v33, %v675_v59  ;;  %v957_v60 = vsel %vm956_vm12, %v1842_v52, %v953_v9  ;;  %v991_v27 = vsub.f32 1.0, %v990_v16  ;;  %vm996_vm3 = vmor %vm994_vm15, %vm995_vm14 }
 0x124   : > { %v1050_v30 = vrot.slane %v2386_v43, 1  ;;  %1792 = vmatmul.msk.f32.gmra.mxu0 %vm442_vm1, %v2386_v43  ;;  %v962_v49 = vsel %vm959_vm13, %v961_v37, %v957_v60  ;;  %v1026_v0 = vrot.slane %v2386_v43, 7 }
 0x125   : > { %v1051_v54 = vrot.slane %v1019_v23, 1  ;;  %v963_v53 = vmul.f32 %v962_v49, %v938_v24  ;;  %v1027_v18 = vrot.slane %v1019_v23, 7  ;;  %v992_v6 = vmul.f32 %v1844_v17, %v991_v27 }
 0x126   : > { %v1057_v46 = vsel %vm422_vm7, %v1049_v38, %v1050_v30  ;;  %v1001_v38 = vor.u32 1.1754944e-38, %v1000_v1 }
 0x127   : > { %v1065_v55 = vmul.f32 %v2052_v63, %v1057_v46  ;;  %v1056_v52 = vsel %vm422_vm7, %v1050_v30, %v1051_v54  ;;  %v1775_v5 = vclamps-f32 %v963_v53, 1.0  ;;  %v1032_v20 = vsel %vm397_vm2, %v1026_v0, %v1027_v18 }
 0x128   : > { %v993_v47 = vadd.f32 %v1844_v17, %v992_v6  ;;  %v978_v63 = vmul.f32 %v977_v36, %v2248_v15 }
 0x129   : > { %1801 = vmatmul.msk.f32.gmra.mxu1 %vm442_vm1, %v1065_v55  ;;  %v1012_v61 = vadd.f32 1.0, %v1775_v5 }
 0x12a   : > { %v997_v25 = vsel %vm996_vm3, %v1844_v17, %v993_v47 }
 0x12b   : > { %v1020_v13 = vmul.f32 %v1012_v61, %v676_v7  ;;  %v1002_v21 = vsel %vm999_vm4, %v1001_v38, %v997_v25 }
 0x12c   : > { %1793 = vmatmul.msk.f32.gmra.mxu0 %vm442_vm1, %v1019_v23  ;;  %v1003_v57 = vmul.f32 %v1002_v21, %v978_v63 }
 0x12d   : > { %v1028_v44 = vrot.slane %v1020_v13, 7  ;;  %v1052_v22 = vrot.slane %v1020_v13, 1 }
 0x12e   : > { %v1776_v39 = vclamps-f32 %v1003_v57, 1.0 }
 0x12f   : > { %v1055_v31 = vsel %vm422_vm7, %v1051_v54, %v1052_v22  ;;  %v1031_v8 = vsel %vm397_vm2, %v1027_v18, %v1028_v44 }
 0x130   : > { %v1013_v15 = vadd.f32 1.0, %v1776_v39  ;;  %v1067_v34 = vmul.f32 %v2041_v56, %v1055_v31 }
 0x131   : > { %1802 = vmatmul.msk.f32.gmra.mxu1 %vm442_vm1, %v1056_v52 }
 0x132   : > { %v1021_v29 = vmul.f32 %v1013_v15, %v677_v28 }
 0x134   : > { %1794 = vmatmul.msk.f32.gmra.mxu0 %vm442_vm1, %v1020_v13  ;;  %v1029_v35 = vrot.slane %v1021_v29, 7  ;;  %v1053_v45 = vrot.slane %v1021_v29, 1 }
 0x136   : > { %v1037_v62 = vsel %vm397_vm2, %v1029_v35, %v1022_v58  ;;  %v1054_v42 = vsel %vm422_vm7, %v1052_v22, %v1053_v45  ;;  %v1061_v19 = vsel %vm422_vm7, %v1053_v45, %v1046_v41  ;;  %v1030_v59 = vsel %vm397_vm2, %v1028_v44, %v1029_v35 }
 0x137   : > { %v1038_v56 = vmul.f32 %v1983_v26, %v1037_v62  ;;  %v1024_v58 = vrot.slane %v2302_v2, 7  ;;  %v1069_v26 = vmul.f32 %v2058_v3, %v1061_v19  ;;  %v1025_v2 = vrot.slane %v2358_v48, 7 }
 0x139   : > { %1803 = vmatmul.msk.f32.gmra.mxu1 %vm442_vm1, %v1067_v34  ;;  %1779 = vmatmul.msk.f32.vlgmr.msrb.gmra.mxu3 %vm442_vm1, %v1038_v56  ;;  %v1035_v51 = vsel %vm397_vm2, %v1023_v10, %v1024_v58  ;;  %v1034_v33 = vsel %vm397_vm2, %v1024_v58, %v1025_v2  ;;  %v1033_v14 = vsel %vm397_vm2, %v1025_v2, %v1026_v0 }
 0x13a   : > { %v1040_v41 = vmul.f32 %v2011_v40, %v1035_v51  ;;  %v1042_v10 = vmul.f32 %v1955_v12, %v1033_v14  ;;  %v1044_v40 = vmul.f32 %v1996_v32, %v1031_v8 }
 0x13c   : > { %1795 = vmatmul.msk.f32.gmra.mxu0 %vm442_vm1, %v1021_v29 }
 0x141   : > { %1804 = vmatmul.msk.f32.gmra.mxu1 %vm442_vm1, %v1054_v42  ;;  %1780 = vmatmul.msk.f32.gmra.mxu3 %vm442_vm1, %v2333_v50 }
 0x149   : > { %1805 = vmatmul.msk.f32.gmra.mxu1 %vm442_vm1, %v1069_v26  ;;  %1781 = vmatmul.msk.f32.gmra.mxu3 %vm442_vm1, %v1040_v41 }
 0x151   : > { %1782 = vmatmul.msk.f32.gmra.mxu3 %vm442_vm1, %v1034_v33 }
 0x159   : > { %1783 = vmatmul.msk.f32.gmra.mxu3 %vm442_vm1, %v1042_v10 }
 0x161   : > { %1784 = vmatmul.msk.f32.gmra.mxu3 %vm442_vm1, %v1032_v20 }
 0x169   : > { %1785 = vmatmul.msk.f32.gmra.mxu3 %vm442_vm1, %v1044_v40 }
 0x16f   : > { %v1185_v3 = vpop.f32.mrf.mxu0 }
 0x171   : > { %1786 = vmatmul.msk.f32.gmra.mxu3 %vm442_vm1, %v1030_v59 }
 0x178   : > { %v1188_v17 = vpop.f32.mrf.mxu0 }
 0x17b   : > { %v1255_v50 = vpop.f32.mrf.mxu1 }
 0x186   : > { %v1191_v54 = vpop.f32.mrf.mxu0 }
 0x18b   : > { %v1258_v43 = vpop.f32.mrf.mxu1 }
 0x196   : > { %v1194_v22 = vpop.f32.mrf.mxu0 }
 0x199   : > { %v1261_v18 = vpop.f32.mrf.mxu1 }
 0x1a6   : > { %v1264_v29 = vpop.f32.mrf.mxu1 }
 0x1bc   : > { %v1117_v48 = vpop.f32.mrf.mxu3 }
 0x1bd   : > { %v1186_v9 = vadd.f32 %v1185_v3, %v1117_v48 }
 0x1bf   : > { %v1279_v12 = vadd.f32 %v1255_v50, %v1186_v9 }
 0x1c1   : > { %v2461_v24 = vadd.f32 %v2458_v4, %v1279_v12 }
 0x1c3   : > { %v2464_v32 = vmul.f32 0.70710677, %v2461_v24 }
 0x1c4   : > { %v1120_v37 = vpop.f32.mrf.mxu3 }
 0x1c5   : > { %v1315_v23 = vmul.f32 %v2464_v32, %v2464_v32  ;;  %v1189_v60 = vadd.f32 %v1188_v17, %v1120_v37 }
 0x1c7   : > { %v1316_v16 = vmin.f32 %v1315_v23, 16.0  ;;  %v1280_v36 = vadd.f32 %v1258_v43, %v1189_v60  ;;  %v1197_v60 = vpop.f32.mrf.mxu0 }
 0x1c9   : > { %v1317_v30 = vmul.f32 2.1237322e-06, %v1316_v16  ;;  %v1328_v49 = vmul.f32 3.8918573e-05, %v1316_v16  ;;  %v2469_v11 = vadd.f32 %v2458_v4, %v1280_v36 }
 0x1cb   : > { %v1318_v53 = vadd.f32 0.00028619796, %v1317_v30  ;;  %v1329_v27 = vadd.f32 0.001143296, %v1328_v49  ;;  %v2472_v0 = vmul.f32 0.70710677, %v2469_v11 }
 0x1cc   : > { %v1123_v46 = vpop.f32.mrf.mxu3 }
 0x1cd   : > { %v1319_v1 = vmul.f32 %v1318_v53, %v1316_v16  ;;  %v1330_v55 = vmul.f32 %v1329_v27, %v1316_v16  ;;  %v1192_v52 = vadd.f32 %v1191_v54, %v1123_v46  ;;  %v1355_v5 = vmul.f32 %v2472_v0, %v2472_v0 }
 0x1cf   : > { %v1320_v6 = vadd.f32 0.0036580483, %v1319_v1  ;;  %v1331_v20 = vadd.f32 0.014752088, %v1330_v55  ;;  %v1281_v7 = vadd.f32 %v1261_v18, %v1192_v52  ;;  %v1356_v61 = vmin.f32 %v1355_v5, 16.0  ;;  %v1267_v52 = vpop.f32.mrf.mxu1 }
 0x1d1   : > { %v1321_v47 = vmul.f32 %v1320_v6, %v1316_v16  ;;  %v1332_v38 = vmul.f32 %v1331_v20, %v1316_v16  ;;  %v2477_v63 = vadd.f32 %v2458_v4, %v1281_v7  ;;  %v1357_v13 = vmul.f32 2.1237322e-06, %v1356_v61 }
 0x1d2   : > { %v1368_v25 = vmul.f32 3.8918573e-05, %v1356_v61 }
 0x1d3   : > { %v1322_v21 = vadd.f32 0.05243302, %v1321_v47  ;;  %v1333_v44 = vadd.f32 0.112945676, %v1332_v38  ;;  %v1358_v57 = vadd.f32 0.00028619796, %v1357_v13 }
 0x1d4   : > { %v1369_v31 = vadd.f32 0.001143296, %v1368_v25  ;;  %v2480_v39 = vmul.f32 0.70710677, %v2477_v63  ;;  %v1126_v8 = vpop.f32.mrf.mxu3 }
 0x1d5   : > { %v1334_v28 = vmul.f32 %v1333_v44, %v1316_v16  ;;  %v1195_v15 = vadd.f32 %v1194_v22, %v1126_v8  ;;  %v1323_v34 = vmul.f32 %v1322_v21, %v1316_v16  ;;  %v1359_v35 = vmul.f32 %v1358_v57, %v1356_v61 }
 0x1d6   : > { %v1370_v45 = vmul.f32 %v1369_v31, %v1356_v61  ;;  %v1395_v62 = vmul.f32 %v2480_v39, %v2480_v39  ;;  %v2507_v31 = vmul.f32 0.5, %v2461_v24  ;;  %v1200_v24 = vpop.f32.mrf.mxu0 }
 0x1d7   : > { %v1335_v42 = vadd.f32 0.4994258, %v1334_v28  ;;  %v1282_v19 = vadd.f32 %v1264_v29, %v1195_v15  ;;  %v1360_v59 = vadd.f32 0.0036580483, %v1359_v35  ;;  %v1324_v41 = vadd.f32 0.18741608, %v1323_v34 }
 0x1d8   : > { %v1371_v56 = vadd.f32 0.014752088, %v1370_v45  ;;  %v2484_v58 = vmin.f32 %v1395_v62, 16.0 }
 0x1d9   : > { %v1336_v51 = vmul.f32 %v1335_v42, %v1316_v16  ;;  %v2487_v26 = vadd.f32 %v2458_v4, %v1282_v19  ;;  %v1361_v2 = vmul.f32 %v1360_v59, %v1356_v61  ;;  %v1325_v17 = vmul.f32 %v1324_v41, %v1316_v16 }
 0x1da   : > { %v1372_v33 = vmul.f32 %v1371_v56, %v1356_v61  ;;  %v1397_v14 = vmul.f32 2.1237322e-06, %v2484_v58  ;;  %v1408_v40 = vmul.f32 3.8918573e-05, %v2484_v58 }
 0x1db   : > { %v1337_v10 = vadd.f32 1.0, %v1336_v51  ;;  %v2492_v3 = vmul.f32 0.70710677, %v2487_v26  ;;  %v1362_v50 = vadd.f32 0.05243302, %v1361_v2 }
 0x1dc   : > { %v1373_v48 = vadd.f32 0.112945676, %v1372_v33  ;;  %v1398_v9 = vadd.f32 0.00028619796, %v1397_v14  ;;  %v1129_v12 = vpop.f32.mrf.mxu3  ;;  %v1409_v36 = vadd.f32 0.001143296, %v1408_v40 }
 0x1dd   : > { %1845 = vrcp.f32 %v1337_v10  ;;  %v1363_v43 = vmul.f32 %v1362_v50, %v1356_v61  ;;  %v1435_v30 = vmul.f32 %v2492_v3, %v2492_v3  ;;  %v1198_v53 = vadd.f32 %v1197_v60, %v1129_v12 }
 0x1de   : > { %v1374_v37 = vmul.f32 %v1373_v48, %v1356_v61  ;;  %v1399_v23 = vmul.f32 %v1398_v9, %v2484_v58  ;;  %v1410_v18 = vmul.f32 %v1409_v36, %v2484_v58  ;;  %v1326_v1 = vadd.f32 1.1283791, %v1325_v17  ;;  %v1270_v17 = vpop.f32.mrf.mxu1 }
 0x1df   : > { %v1364_v49 = vadd.f32 0.18741608, %v1363_v43  ;;  %v2498_v46 = vmin.f32 %v1435_v30, 16.0  ;;  %v1283_v25 = vadd.f32 %v1267_v52, %v1198_v53  ;;  %v1347_v28 = vand.u32 2147483647, %v1337_v10 }
 0x1e0   : > { %v1375_v54 = vadd.f32 0.4994258, %v1374_v37  ;;  %v1400_v27 = vadd.f32 0.0036580483, %v1399_v23  ;;  %v1411_v6 = vadd.f32 0.014752088, %v1410_v18  ;;  %v1327_v19 = vmul.f32 %v1326_v1, %v2464_v32 }
 0x1e1   : > { %v1437_v20 = vmul.f32 2.1237322e-06, %v2498_v46  ;;  %v1448_v7 = vmul.f32 3.8918573e-05, %v2498_v46  ;;  %v1365_v38 = vmul.f32 %v1364_v49, %v1356_v61  ;;  %v1349_v15 = vand.u32 2147483648, %v1337_v10 }
 0x1e2   : > { %v1376_v55 = vmul.f32 %v1375_v54, %v1356_v61  ;;  %v1401_v5 = vmul.f32 %v1400_v27, %v2484_v58  ;;  %v1412_v44 = vmul.f32 %v1411_v6, %v2484_v58  ;;  %v2514_v42 = vadd.f32 %v2458_v4, %v1283_v25 }
 0x1e3   : > { %v1846_v16 = vpop.eup %1845  ;;  %v1438_v22 = vadd.f32 0.00028619796, %v1437_v20  ;;  %v1449_v57 = vadd.f32 0.001143296, %v1448_v7  ;;  %vm1343_vm7 = vweird.f32 %v1337_v10  ;;  %v1366_v59 = vadd.f32 1.1283791, %v1365_v38 }
 0x1e4   : > { %v1339_v47 = vmul.f32 %v1846_v16, %v1337_v10  ;;  %v2503_v13 = vadd.f32 1.0, %v1376_v55  ;;  %v1402_v21 = vadd.f32 0.05243302, %v1401_v5  ;;  %vm1344_vm2 = vweird.f32 %v1846_v16  ;;  %v1132_v34 = vpop.f32.mrf.mxu3 }
 0x1e5   : > { %v1413_v61 = vadd.f32 0.112945676, %v1412_v44  ;;  %v1439_v45 = vmul.f32 %v1438_v22, %v2498_v46  ;;  %v1450_v62 = vmul.f32 %v1449_v57, %v2498_v46  ;;  %vm1348_vm5 = vcmp.eq.f32.partialorder %v1347_v28, 8.507059e+37  ;;  %vm1345_vm6 = vmor %vm1343_vm7, %vm1344_vm2 }
 0x1e6   : > { %v1340_v8 = vsub.f32 1.0, %v1339_v47  ;;  %1847 = vrcp.f32 %v2503_v13  ;;  %v1403_v29 = vmul.f32 %v1402_v21, %v2484_v58  ;;  %v1350_v33 = vor.u32 1.1754944e-38, %v1349_v15 }
 0x1e7   : > { %v1414_v56 = vmul.f32 %v1413_v61, %v2484_v58  ;;  %v1440_v41 = vadd.f32 0.0036580483, %v1439_v45  ;;  %v1451_v2 = vadd.f32 0.014752088, %v1450_v62  ;;  %v2520_v40 = vmul.f32 0.70710677, %v2514_v42 }
 0x1e8   : > { %v1341_v35 = vmul.f32 %v1846_v16, %v1340_v8  ;;  %v1201_v50 = vadd.f32 %v1200_v24, %v1132_v34  ;;  %v1404_v12 = vadd.f32 0.18741608, %v1403_v29  ;;  %v1367_v37 = vmul.f32 %v1366_v59, %v2472_v0 }
 0x1e9   : > { %v1415_v14 = vadd.f32 0.4994258, %v1414_v56  ;;  %v1441_v32 = vmul.f32 %v1440_v41, %v2498_v46  ;;  %v1452_v10 = vmul.f32 %v1451_v2, %v2498_v46  ;;  %v1387_v60 = vand.u32 2147483647, %v2503_v13 }
 0x1ea   : > { %v1342_v51 = vadd.f32 %v1846_v16, %v1341_v35  ;;  %v1389_v27 = vand.u32 2147483648, %v2503_v13  ;;  %v1475_v18 = vmul.f32 %v2520_v40, %v2520_v40  ;;  %v1284_v1 = vadd.f32 %v1270_v17, %v1201_v50  ;;  %v1861_v35 = vld [vmem:[%s1941_s30] sm:$0xff] }
 0x1eb   : > { %v1416_v30 = vmul.f32 %v1415_v14, %v2484_v58  ;;  %v1442_v49 = vadd.f32 0.05243302, %v1441_v32  ;;  %v1453_v54 = vadd.f32 0.112945676, %v1452_v10  ;;  %vm1383_vm9 = vweird.f32 %v2503_v13 }
 0x1ec   : > { %v1848_v48 = vpop.eup %1847  ;;  %v1346_v9 = vsel %vm1345_vm6, %v1846_v16, %v1342_v51  ;;  %v1405_v16 = vmul.f32 %v1404_v12, %v2484_v58  ;;  %v2536_v20 = vmin.f32 %v1475_v18, 16.0  ;;  %v1135_v7 = vpop.f32.mrf.mxu3  ;;  %vm2539_vm0 = vcmp.eq.f32.partialorder %v1387_v60, 8.507059e+37 }
 0x1ed   : > { %v1351_v43 = vsel %vm1348_vm5, %v1350_v33, %v1346_v9  ;;  %v1379_v23 = vmul.f32 %v1848_v48, %v2503_v13  ;;  %v2532_v0 = vadd.f32 1.0, %v1416_v30  ;;  %v1454_v52 = vmul.f32 %v1453_v54, %v2498_v46  ;;  %v1203_v58 = vpop.f32.mrf.mxu0 }
 0x1ee   : > { %v1352_v36 = vmul.f32 %v1351_v43, %v1327_v19  ;;  %vm1384_vm8 = vweird.f32 %v1848_v48  ;;  %v1443_v6 = vmul.f32 %v1442_v49, %v2498_v46  ;;  %v1390_v21 = vor.u32 1.1754944e-38, %v1389_v27  ;;  %v1273_v19 = vpop.f32.mrf.mxu1 }
 0x1ef   : > { %v1380_v53 = vsub.f32 1.0, %v1379_v23  ;;  %1849 = vrcp.f32 %v2532_v0  ;;  %v1455_v44 = vadd.f32 0.4994258, %v1454_v52  ;;  %v2545_v22 = vadd.f32 %v2458_v4, %v1284_v1  ;;  %vm1385_vm10 = vmor %vm1383_vm9, %vm1384_vm8  ;;  %v1862_v52 = vld [vmem:[%s1941_s30 + $0x8] sm:$0xff] }
 0x1f0   : > { %v1806_v55 = vclamps-f32 %v1352_v36, 1.0  ;;  %v1477_v8 = vmul.f32 2.1237322e-06, %v2536_v20  ;;  %v1488_v13 = vmul.f32 3.8918573e-05, %v2536_v20  ;;  %v1204_v28 = vadd.f32 %v1203_v58, %v1135_v7 }
 0x1f1   : > { %v1381_v5 = vmul.f32 %v1848_v48, %v1380_v53  ;;  %v1406_v29 = vadd.f32 1.1283791, %v1405_v16  ;;  %v1444_v61 = vadd.f32 0.18741608, %v1443_v6  ;;  %v1456_v34 = vmul.f32 %v1455_v44, %v2498_v46 }
 0x1f2   : > { %v1635_v47 = vadd.f32 1.0, %v1806_v55  ;;  %v1478_v62 = vadd.f32 0.00028619796, %v1477_v8  ;;  %v1489_v24 = vadd.f32 0.001143296, %v1488_v13  ;;  %v1300_v59 = vmul.f32 0.5, %v2469_v11 }
 0x1f3   : > { %v1382_v25 = vadd.f32 %v1848_v48, %v1381_v5  ;;  %v1427_v51 = vand.u32 2147483647, %v2532_v0  ;;  %v2563_v41 = vadd.f32 1.0, %v1456_v34  ;;  %v2570_v50 = vmul.f32 0.70710677, %v2545_v22 }
 0x1f4   : > { %v1643_v57 = vmul.f32 %v1635_v47, %v2507_v31  ;;  %v1479_v33 = vmul.f32 %v1478_v62, %v2536_v20  ;;  %v1490_v14 = vmul.f32 %v1489_v24, %v2536_v20  ;;  %v2573_v12 = vmul.f32 0.5, %v2477_v63  ;;  %v1138_v53 = vpop.f32.mrf.mxu3 }
 0x1f5   : > { %v1386_v15 = vsel %vm1385_vm10, %v1848_v48, %v1382_v25  ;;  %v1850_v2 = vpop.eup %1849  ;;  %v1285_v48 = vadd.f32 %v1273_v19, %v1204_v28  ;;  %v1407_v11 = vmul.f32 %v1406_v29, %v2480_v39  ;;  %vm1423_vm11 = vweird.f32 %v2532_v0  ;;  %v1206_v16 = vpop.f32.mrf.mxu0 }
 0x1f6   : > { %v1651_v31 = vadd.f32 %v1861_v35, %v1643_v57  ;;  %v1391_v45 = vsel %vm2539_vm0, %v1390_v21, %v1386_v15  ;;  %v1419_v32 = vmul.f32 %v1850_v2, %v2532_v0  ;;  %v1429_v10 = vand.u32 2147483648, %v2532_v0 }
 0x1f7   : > { %v1392_v56 = vmul.f32 %v1391_v45, %v1367_v37  ;;  %v1445_v17 = vmul.f32 %v1444_v61, %v2498_v46  ;;  %1851 = vrcp.f32 %v2563_v41  ;;  %v1480_v23 = vadd.f32 0.0036580483, %v1479_v33  ;;  %v1276_v61 = vpop.f32.mrf.mxu1 }
 0x1f8   : > { %1659 = vst.msk [vmem:[%s2555_s19] sm:$0xff] %vm442_vm1, %v1651_v31  ;;  %v1420_v37 = vsub.f32 1.0, %v1419_v32  ;;  %v1491_v60 = vadd.f32 0.014752088, %v1490_v14  ;;  %vm1424_vm12 = vweird.f32 %v1850_v2  ;;  %vm2581_vm13 = vcmp.eq.f32.partialorder %v1427_v51, 8.507059e+37 }
 0x1f9   : > { %v1807_v9 = vclamps-f32 %v1392_v56, 1.0  ;;  %v1515_v39 = vmul.f32 %v2570_v50, %v2570_v50  ;;  %v2588_v36 = vadd.f32 %v2458_v4, %v1285_v48  ;;  %v1481_v49 = vmul.f32 %v1480_v23, %v2536_v20  ;;  %vm1425_vm15 = vmor %vm1423_vm11, %vm1424_vm12 }
 0x1fa   : > { %v1421_v46 = vmul.f32 %v1850_v2, %v1420_v37  ;;  %v1492_v54 = vmul.f32 %v1491_v60, %v2536_v20  ;;  %v1430_v27 = vor.u32 1.1754944e-38, %v1429_v10  ;;  %v1446_v18 = vadd.f32 1.1283791, %v1445_v17 }
 0x1fb   : > { %v1636_v43 = vadd.f32 1.0, %v1807_v9  ;;  %v2592_v1 = vmin.f32 %v1515_v39, 16.0  ;;  %v2595_v55 = vmul.f32 0.70710677, %v2588_v36  ;;  %vm1463_vm14 = vweird.f32 %v2563_v41 }
 0x1fc   : > { %v1422_v6 = vadd.f32 %v1850_v2, %v1421_v46  ;;  %v1493_v7 = vadd.f32 0.112945676, %v1492_v54  ;;  %v1207_v21 = vadd.f32 %v1206_v16, %v1138_v53  ;;  %v1467_v8 = vand.u32 2147483647, %v2563_v41  ;;  %v1863_v54 = vld [vmem:[%s1941_s30 + $0x10] sm:$0xff] }
 0x1fd   : > { %v1644_v30 = vmul.f32 %v1636_v43, %v1300_v59  ;;  %v1852_v47 = vpop.eup %1851  ;;  %v1517_v38 = vmul.f32 2.1237322e-06, %v2592_v1  ;;  %v1528_v58 = vmul.f32 3.8918573e-05, %v2592_v1  ;;  %v1555_v25 = vmul.f32 %v2595_v55, %v2595_v55 }
 0x1fe   : > { %v1426_v44 = vsel %vm1425_vm15, %v1850_v2, %v1422_v6  ;;  %v1459_v57 = vmul.f32 %v1852_v47, %v2563_v41  ;;  %v1482_v13 = vadd.f32 0.05243302, %v1481_v49  ;;  %v1494_v28 = vmul.f32 %v1493_v7, %v2536_v20 }
 0x1ff   : > { %v1652_v5 = vadd.f32 %v1862_v52, %v1644_v30  ;;  %v1431_v0 = vsel %vm2581_vm13, %v1430_v27, %v1426_v44  ;;  %v1518_v15 = vadd.f32 0.00028619796, %v1517_v38  ;;  %v1529_v29 = vadd.f32 0.001143296, %v1528_v58 }
 0x200   : > { %v1432_v34 = vmul.f32 %v1431_v0, %v1407_v11  ;;  %v1460_v35 = vsub.f32 1.0, %v1459_v57  ;;  %v1469_v31 = vand.u32 2147483648, %v2563_v41  ;;  %v2614_v45 = vmin.f32 %v1555_v25, 16.0 }
 0x201   : > { %1660 = vst.msk [vmem:[%s2555_s19 + $0x8] sm:$0xff] %vm442_vm1, %v1652_v5  ;;  %v1495_v62 = vadd.f32 0.4994258, %v1494_v28  ;;  %v1519_v24 = vmul.f32 %v1518_v15, %v2592_v1  ;;  %v1530_v19 = vmul.f32 %v1529_v29, %v2592_v1  ;;  %v1286_v59 = vadd.f32 %v1276_v61, %v1207_v21 }
 0x202   : > { %v1808_v56 = vclamps-f32 %v1432_v34, 1.0  ;;  %v1461_v51 = vmul.f32 %v1852_v47, %v1460_v35  ;;  %vm1464_vm3 = vweird.f32 %v1852_v47  ;;  %v1557_v2 = vmul.f32 2.1237322e-06, %v2614_v45 }
 0x203   : > { %v1483_v33 = vmul.f32 %v1482_v13, %v2536_v20  ;;  %v1496_v14 = vmul.f32 %v1495_v62, %v2536_v20  ;;  %v1531_v48 = vadd.f32 0.014752088, %v1530_v19  ;;  %v1568_v9 = vmul.f32 3.8918573e-05, %v2614_v45  ;;  %vm1465_vm4 = vmor %vm1463_vm14, %vm1464_vm3 }
 0x204   : > { %v1637_v11 = vadd.f32 1.0, %v1808_v56  ;;  %v1462_v32 = vadd.f32 %v1852_v47, %v1461_v51  ;;  %v1470_v10 = vor.u32 1.1754944e-38, %v1469_v31  ;;  %v1520_v17 = vadd.f32 0.0036580483, %v1519_v24 }
 0x205   : > { %v2624_v43 = vadd.f32 1.0, %v1496_v14  ;;  %v1532_v37 = vmul.f32 %v1531_v48, %v2592_v1  ;;  %v1558_v23 = vadd.f32 0.00028619796, %v1557_v2  ;;  %v1569_v60 = vadd.f32 0.001143296, %v1568_v9 }
 0x206   : > { %v1645_v63 = vmul.f32 %v1637_v11, %v2573_v12  ;;  %v1447_v39 = vmul.f32 %v1446_v18, %v2492_v3  ;;  %v1466_v30 = vsel %vm1465_vm4, %v1852_v47, %v1462_v32  ;;  %vm1468_vm2 = vcmp.eq.f32.partialorder %v1467_v8, 8.507059e+37 }
 0x207   : > { %v1471_v46 = vsel %vm1468_vm2, %v1470_v10, %v1466_v30  ;;  %v1484_v49 = vadd.f32 0.18741608, %v1483_v33  ;;  %1853 = vrcp.f32 %v2624_v43  ;;  %v2631_v41 = vadd.f32 %v2458_v4, %v1286_v59 }
 0x208   : > { %v1653_v53 = vadd.f32 %v1863_v54, %v1645_v63  ;;  %v1472_v27 = vmul.f32 %v1471_v46, %v1447_v39  ;;  %v1521_v16 = vmul.f32 %v1520_v17, %v2592_v1  ;;  %v1533_v52 = vadd.f32 0.112945676, %v1532_v37 }
 0x209   : > { %v1559_v5 = vmul.f32 %v1558_v23, %v2614_v45  ;;  %v1570_v12 = vmul.f32 %v1569_v60, %v2614_v45  ;;  %v1485_v18 = vmul.f32 %v1484_v49, %v2536_v20  ;;  %v2642_v4 = vmul.f32 0.70710677, %v2631_v41 }
 0x20a   : > { %1661 = vst.msk [vmem:[%s2555_s19 + $0x10] sm:$0xff] %vm442_vm1, %v1653_v53  ;;  %v1809_v3 = vclamps-f32 %v1472_v27, 1.0  ;;  %v1534_v6 = vmul.f32 %v1533_v52, %v2592_v1  ;;  %v1302_v47 = vmul.f32 0.5, %v2487_v26  ;;  %v1522_v58 = vadd.f32 0.05243302, %v1521_v16  ;;  %v1864_v26 = vld [vmem:[%s1941_s30 + $0x18] sm:$0xff] }
 0x20b   : > { %v1571_v7 = vadd.f32 0.014752088, %v1570_v12  ;;  %v1560_v44 = vadd.f32 0.0036580483, %v1559_v5  ;;  %v1595_v8 = vmul.f32 %v2642_v4, %v2642_v4  ;;  %v1486_v0 = vadd.f32 1.1283791, %v1485_v18 }
 0x20c   : > { %v1638_v38 = vadd.f32 1.0, %v1809_v3  ;;  %v1535_v21 = vadd.f32 0.4994258, %v1534_v6  ;;  %v1509_v35 = vand.u32 2147483648, %v2624_v43  ;;  %v1523_v31 = vmul.f32 %v1522_v58, %v2592_v1 }
 0x20d   : > { %v1854_v25 = vpop.eup %1853  ;;  %v1572_v57 = vmul.f32 %v1571_v7, %v2614_v45  ;;  %v2650_v29 = vmin.f32 %v1595_v8, 16.0  ;;  %v1561_v24 = vmul.f32 %v1560_v44, %v2614_v45  ;;  %v1507_v51 = vand.u32 2147483647, %v2624_v43  ;;  %v1865_v44 = vld [vmem:[%s1941_s30 + $0x20] sm:$0xff] }
 0x20e   : > { %v1646_v20 = vmul.f32 %v1638_v38, %v1302_v47  ;;  %v1499_v13 = vmul.f32 %v1854_v25, %v2624_v43  ;;  %v1536_v28 = vmul.f32 %v1535_v21, %v2592_v1  ;;  %vm1504_vm7 = vweird.f32 %v1854_v25 }
 0x20f   : > { %v1573_v15 = vadd.f32 0.112945676, %v1572_v57  ;;  %v1597_v59 = vmul.f32 2.1237322e-06, %v2650_v29  ;;  %v1608_v2 = vmul.f32 3.8918573e-05, %v2650_v29  ;;  %vm1503_vm5 = vweird.f32 %v2624_v43 }
 0x210   : > { %v1654_v61 = vadd.f32 %v1864_v26, %v1646_v20  ;;  %v1500_v34 = vsub.f32 1.0, %v1499_v13  ;;  %v2655_v62 = vadd.f32 1.0, %v1536_v28  ;;  %v1524_v14 = vadd.f32 0.18741608, %v1523_v31  ;;  %vm1505_vm6 = vmor %vm1503_vm5, %vm1504_vm7 }
 0x211   : > { %v1574_v19 = vmul.f32 %v1573_v15, %v2614_v45  ;;  %v1598_v9 = vadd.f32 0.00028619796, %v1597_v59  ;;  %v1487_v11 = vmul.f32 %v1486_v0, %v2520_v40  ;;  %v1510_v32 = vor.u32 1.1754944e-38, %v1509_v35 }
 0x212   : > { %1662 = vst.msk [vmem:[%s2555_s19 + $0x18] sm:$0xff] %vm442_vm1, %v1654_v61  ;;  %v1501_v56 = vmul.f32 %v1854_v25, %v1500_v34  ;;  %1855 = vrcp.f32 %v2655_v62  ;;  %v1562_v10 = vadd.f32 0.05243302, %v1561_v24  ;;  %v1609_v17 = vadd.f32 0.001143296, %v1608_v2 }
 0x213   : > { %v1575_v48 = vadd.f32 0.4994258, %v1574_v19  ;;  %vm1508_vm8 = vcmp.eq.f32.partialorder %v1507_v51, 8.507059e+37  ;;  %v1599_v60 = vmul.f32 %v1598_v9, %v2650_v29  ;;  %v1525_v30 = vmul.f32 %v1524_v14, %v2592_v1 }
 0x214   : > { %v1502_v33 = vadd.f32 %v1854_v25, %v1501_v56  ;;  %v1610_v43 = vmul.f32 %v1609_v17, %v2650_v29  ;;  %v1563_v40 = vmul.f32 %v1562_v10, %v2614_v45  ;;  %v1303_v52 = vmul.f32 0.5, %v2514_v42 }
 0x215   : > { %v1576_v23 = vmul.f32 %v1575_v48, %v2614_v45  ;;  %v1600_v16 = vadd.f32 0.0036580483, %v1599_v60  ;;  %v1526_v12 = vadd.f32 1.1283791, %v1525_v30  ;;  %v1547_v1 = vand.u32 2147483647, %v2655_v62 }
 0x216   : > { %v1506_v37 = vsel %vm1505_vm6, %v1854_v25, %v1502_v33  ;;  %v1611_v54 = vadd.f32 0.014752088, %v1610_v43  ;;  %v1549_v6 = vand.u32 2147483648, %v2655_v62  ;;  %v1564_v7 = vadd.f32 0.18741608, %v1563_v40 }
 0x217   : > { %v1511_v63 = vsel %vm1508_vm8, %v1510_v32, %v1506_v37  ;;  %v1577_v46 = vadd.f32 1.0, %v1576_v23  ;;  %v1601_v58 = vmul.f32 %v1600_v16, %v2650_v29  ;;  %vm1543_vm0 = vweird.f32 %v2655_v62  ;;  %v1866_v23 = vld [vmem:[%s1941_s30 + $0x28] sm:$0xff] }
 0x218   : > { %v1512_v39 = vmul.f32 %v1511_v63, %v1487_v11  ;;  %v1856_v49 = vpop.eup %1855  ;;  %v1612_v18 = vmul.f32 %v1611_v54, %v2650_v29  ;;  %v1527_v20 = vmul.f32 %v1526_v12, %v2570_v50  ;;  %v1550_v13 = vor.u32 1.1754944e-38, %v1549_v6 }
 0x219   : > { %v1539_v27 = vmul.f32 %v1856_v49, %v2655_v62  ;;  %1857 = vrcp.f32 %v1577_v46  ;;  %vm1544_vm9 = vweird.f32 %v1856_v49  ;;  %v1565_v0 = vmul.f32 %v1564_v7, %v2614_v45 }
 0x21a   : > { %v1810_v53 = vclamps-f32 %v1512_v39, 1.0  ;;  %v1613_v25 = vadd.f32 0.112945676, %v1612_v18  ;;  %vm1545_vm10 = vmor %vm1543_vm0, %vm1544_vm9  ;;  %vm1548_vm11 = vcmp.eq.f32.partialorder %v1547_v1, 8.507059e+37  ;;  %v1602_v26 = vadd.f32 0.05243302, %v1601_v58 }
 0x21b   : > { %v1540_v3 = vsub.f32 1.0, %v1539_v27  ;;  %v1589_v62 = vand.u32 2147483648, %v1577_v46  ;;  %v1566_v19 = vadd.f32 1.1283791, %v1565_v0  ;;  %v1587_v59 = vand.u32 2147483647, %v1577_v46 }
 0x21c   : > { %v1639_v5 = vadd.f32 1.0, %v1810_v53  ;;  %v1614_v8 = vmul.f32 %v1613_v25, %v2650_v29  ;;  %v1603_v45 = vmul.f32 %v1602_v26, %v2650_v29  ;;  %vm1583_vm13 = vweird.f32 %v1577_v46  ;;  %v1867_v53 = vld [vmem:[%s1941_s30 + $0x30] sm:$0xff] }
 0x21d   : > { %v1541_v38 = vmul.f32 %v1856_v49, %v1540_v3  ;;  %v1304_v33 = vmul.f32 0.5, %v2545_v22  ;;  %v1590_v48 = vor.u32 1.1754944e-38, %v1589_v62  ;;  %v1567_v9 = vmul.f32 %v1566_v19, %v2595_v55 }
 0x21e   : > { %v1647_v47 = vmul.f32 %v1639_v5, %v1303_v52  ;;  %v1615_v61 = vadd.f32 0.4994258, %v1614_v8  ;;  %vm1588_vm15 = vcmp.eq.f32.partialorder %v1587_v59, 8.507059e+37  ;;  %v1604_v17 = vadd.f32 0.18741608, %v1603_v45 }
 0x21f   : > { %v1858_v21 = vpop.eup %1857  ;;  %v1542_v57 = vadd.f32 %v1856_v49, %v1541_v38  ;;  %v1305_v39 = vmul.f32 0.5, %v2588_v36  ;;  %v1306_v6 = vmul.f32 0.5, %v2631_v41  ;;  %v1868_v38 = vld [vmem:[%s1941_s30 + $0x38] sm:$0xff] }
 0x220   : > { %v1655_v42 = vadd.f32 %v1865_v44, %v1647_v47  ;;  %v1579_v28 = vmul.f32 %v1858_v21, %v1577_v46  ;;  %v1616_v24 = vmul.f32 %v1615_v61, %v2650_v29  ;;  %vm1584_vm12 = vweird.f32 %v1858_v21 }
 0x221   : > { %v1546_v15 = vsel %vm1545_vm10, %v1856_v49, %v1542_v57  ;;  %vm1585_vm14 = vmor %vm1583_vm13, %vm1584_vm12  ;;  %v1605_v22 = vmul.f32 %v1604_v17, %v2650_v29 }
 0x222   : > { %1663 = vst.msk [vmem:[%s2555_s19 + $0x20] sm:$0xff] %vm442_vm1, %v1655_v42  ;;  %v1551_v34 = vsel %vm1548_vm11, %v1550_v13, %v1546_v15  ;;  %v1580_v35 = vsub.f32 1.0, %v1579_v28  ;;  %v1617_v51 = vadd.f32 1.0, %v1616_v24 }
 0x223   : > { %v1552_v31 = vmul.f32 %v1551_v34, %v1527_v20  ;;  %v1606_v40 = vadd.f32 1.1283791, %v1605_v22 }
 0x224   : > { %v1581_v50 = vmul.f32 %v1858_v21, %v1580_v35  ;;  %1859 = vrcp.f32 %v1617_v51  ;;  %v1629_v54 = vand.u32 2147483648, %v1617_v51  ;;  %v1627_v52 = vand.u32 2147483647, %v1617_v51 }
 0x225   : > { %v1811_v56 = vclamps-f32 %v1552_v31, 1.0  ;;  %vm1623_vm4 = vweird.f32 %v1617_v51  ;;  %v1607_v36 = vmul.f32 %v1606_v40, %v2642_v4 }
 0x226   : > { %v1582_v2 = vadd.f32 %v1858_v21, %v1581_v50  ;;  %v1630_v29 = vor.u32 1.1754944e-38, %v1629_v54  ;;  %vm1628_vm7 = vcmp.eq.f32.partialorder %v1627_v52, 8.507059e+37 }
 0x227   : > { %v1640_v14 = vadd.f32 1.0, %v1811_v56 }
 0x228   : > { %v1586_v11 = vsel %vm1585_vm14, %v1858_v21, %v1582_v2 }
 0x229   : > { %v1648_v32 = vmul.f32 %v1640_v14, %v1304_v33  ;;  %v1591_v10 = vsel %vm1588_vm15, %v1590_v48, %v1586_v11 }
 0x22a   : > { %v1592_v37 = vmul.f32 %v1591_v10, %v1567_v9  ;;  %v1860_v43 = vpop.eup %1859 }
 0x22b   : > { %v1656_v60 = vadd.f32 %v1866_v23, %v1648_v32  ;;  %v1619_v55 = vmul.f32 %v1860_v43, %v1617_v51  ;;  %vm1624_vm3 = vweird.f32 %v1860_v43 }
 0x22c   : > { %v1812_v63 = vclamps-f32 %v1592_v37, 1.0  ;;  %vm1625_vm2 = vmor %vm1623_vm4, %vm1624_vm3 }
 0x22d   : > { %1664 = vst.msk [vmem:[%s2555_s19 + $0x28] sm:$0xff] %vm442_vm1, %v1656_v60  ;;  %v1620_v49 = vsub.f32 1.0, %v1619_v55 }
 0x22e   : > { %v1641_v30 = vadd.f32 1.0, %v1812_v63 }
 0x22f   : > { %v1621_v16 = vmul.f32 %v1860_v43, %v1620_v49 }
 0x230   : > { %v1649_v46 = vmul.f32 %v1641_v30, %v1305_v39 }
 0x231   : > { %v1622_v5 = vadd.f32 %v1860_v43, %v1621_v16 }
 0x232   : > { %v1657_v27 = vadd.f32 %v1867_v53, %v1649_v46 }
 0x233   : > { %v1626_v12 = vsel %vm1625_vm2, %v1860_v43, %v1622_v5 }
 0x234   : > { %1665 = vst.msk [vmem:[%s2555_s19 + $0x30] sm:$0xff] %vm442_vm1, %v1657_v27  ;;  %v1631_v3 = vsel %vm1628_vm7, %v1630_v29, %v1626_v12 }
 0x235   : > { %v1632_v18 = vmul.f32 %v1631_v3, %v1607_v36 }
 0x237   : > { %v1813_v1 = vclamps-f32 %v1632_v18, 1.0 }
 0x239   : > { %v1642_v7 = vadd.f32 1.0, %v1813_v1 }
 0x23b   : > { %v1650_v47 = vmul.f32 %v1642_v7, %v1306_v6 }
 0x23d   : > { %v1658_v58 = vadd.f32 %v1868_v38, %v1650_v47 }
 0x23f   : > { %1666 = vst.msk [vmem:[%s2555_s19 + $0x38] sm:$0xff] %vm442_vm1, %v1658_v58 }
 0x240 PF: > { %s15_s18 = sadd.s32 1, %s1875_s18  }
 0x241   : > { %p12_p4 = scmp.ge.s32.totalorder %s15_s18, 10  }
 0x243   :  { %14 = sbr.rel (!%p12_p4) target bundleno = 1 (0x1), region = 74 }

</bundles_post_ra>
